<compile_context>
chip_gen: v7x
topology: tpu7x:2x2x1
jax: 0.10.0
libtpu: 0.0.40
codegen_flags: <defaults>
</compile_context>

<pallas_src>
import math

import jax
import jax.numpy as jnp
from jax.experimental import pallas as pl
from jax.experimental.pallas import tpu as pltpu


def _pick_tile(n, cands):
    """Largest candidate tile that divides n; falls back to n."""
    for c in cands:
        if c <= n and n % c == 0:
            return c
    return n


# ----------------------------------------------------------------------------
# Kernel B: full-video slot attention (single iteration), encoder/kv inlined,
#           input-length axis tiled with VMEM accumulators.
# ----------------------------------------------------------------------------
def video_slot_attention(videoT, enc_wT, enc_b, wkvT, bkv, slots_init, wq, bq, wu, bu, B, L):
    """videoT: (Cp, B*L) f32 padded channels-major video; returns slots (B, N, S)."""
    Cp, _ = videoT.shape
    FD = enc_wT.shape[0]
    D2 = wkvT.shape[0]
    D = D2 // 2
    N, S = slots_init.shape
    scale = 1.0 / math.sqrt(D)
    # Blocks are only Cp rows -> even tl=32768 is ~1 MiB/buffer, safe on v5e/v6e/v7x VMEM.
    tl = _pick_tile(L, (32768, 16384, 8192, 4096, 2048, 1024, 512, 256, 128))
    nL = L // tl

    def kernel(si_ref, wq_ref, bq_ref, x_ref, we_ref, be_ref, wkv_ref, bkv_ref,
               wu_ref, bu_ref, out_ref, q_sc, num_acc, den_acc):
        l = pl.program_id(1)

        @pl.when(l == 0)
        def _():
            num_acc[...] = jnp.zeros_like(num_acc)
            den_acc[...] = jnp.zeros_like(den_acc)
            # q is invariant across the L reduction: compute once, keep in VMEM scratch.
            q_sc[...] = (jnp.dot(si_ref[...], wq_ref[...],
                                 preferred_element_type=jnp.float32) + bq_ref[...])

        # inline encoder (1x1 conv + ReLU) and k/v projection on the raw video tile
        enc = jnp.maximum(
            jnp.dot(we_ref[...], x_ref[...], preferred_element_type=jnp.float32)
            + be_ref[...], 0.0)                                           # (FD, tl)
        kv = jnp.dot(wkv_ref[...], enc, preferred_element_type=jnp.float32) + bkv_ref[...]
        kT = kv[:D]                                                       # (D, tl)
        vT = kv[D:]                                                       # (D, tl)

        logits = jnp.dot(q_sc[...], kT, preferred_element_type=jnp.float32) * scale  # (N, tl)
        mx = jnp.max(logits, axis=0, keepdims=True)
        e = jnp.exp(logits - mx)
        attn = e / jnp.sum(e, axis=0, keepdims=True)                      # softmax over slots
        # readout without an explicit v transpose: contract both lane axes on the MXU
        num_acc[...] += jax.lax.dot_general(
            attn, vT, dimension_numbers=(((1,), (1,)), ((), ())),
            preferred_element_type=jnp.float32)                           # (N, D)
        den_acc[...] += jnp.sum(attn, axis=1, keepdims=True)              # (N, 1)

        @pl.when(l == nL - 1)
        def _():
            upd = num_acc[...] / (den_acc[...] + 1e-8)
            out_ref[0] = (jnp.dot(upd, wu_ref[...], preferred_element_type=jnp.float32)
                          + bu_ref[...]).astype(out_ref.dtype)

    return pl.pallas_call(
        kernel,
        out_shape=jax.ShapeDtypeStruct((B, N, S), jnp.float32),
        grid_spec=pltpu.PrefetchScalarGridSpec(
            num_scalar_prefetch=0,
            grid=(B, nL),
            in_specs=[
                pl.BlockSpec((N, S), lambda b, l: (0, 0)),
                pl.BlockSpec((S, D), lambda b, l: (0, 0)),
                pl.BlockSpec((1, D), lambda b, l: (0, 0)),
                pl.BlockSpec((Cp, tl), lambda b, l: (0, b * nL + l)),
                pl.BlockSpec((FD, Cp), lambda b, l: (0, 0)),
                pl.BlockSpec((FD, 1), lambda b, l: (0, 0)),
                pl.BlockSpec((D2, FD), lambda b, l: (0, 0)),
                pl.BlockSpec((D2, 1), lambda b, l: (0, 0)),
                pl.BlockSpec((D, S), lambda b, l: (0, 0)),
                pl.BlockSpec((1, S), lambda b, l: (0, 0)),
            ],
            out_specs=pl.BlockSpec((1, N, S), lambda b, l: (b, 0, 0)),
            scratch_shapes=[pltpu.VMEM((N, D), jnp.float32),   # q
                            pltpu.VMEM((N, D), jnp.float32),   # num accumulator
                            pltpu.VMEM((N, 1), jnp.float32)],  # den accumulator
        ),
        compiler_params=pltpu.CompilerParams(
            dimension_semantics=("parallel", "arbitrary")),
    )(slots_init, wq, bq, videoT, enc_wT, enc_b, wkvT, bkv, wu, bu)


# ----------------------------------------------------------------------------
# Fused kernel C+D: per-batch framewise attention (compute_attention), slot
# update, argmax segmentation, flow MLP, flow composition and bilinear warp.
# All T frames of a batch are processed in one grid step; attention / per-frame
# slots never leave VMEM before being consumed by the flow/warp stage.
# ----------------------------------------------------------------------------
def frame_attn_flow_warp(videoT, slots, enc_wT, enc_b, wkvT, bkv, wq, bq, wu, bu,
                         w1a, w1b, b1, w2, b2, T, H, W):
    Cp, _ = videoT.shape
    FD = enc_wT.shape[0]
    D2 = wkvT.shape[0]
    D = D2 // 2
    B, N, S = slots.shape
    HID = w1a.shape[1]
    HW = H * W
    L = T * HW
    scale = 1.0 / math.sqrt(D)

    def kernel(s_ref, x_ref, we_ref, be_ref, wkv_ref, bkv_ref, wq_ref, bq_ref,
               wu_ref, bu_ref, w1a_ref, w1b_ref, b1_ref, w2_ref, b2_ref,
               slots_ref, att_ref, seg_ref, flow_ref, warp_ref):
        x = x_ref[...]                                                    # (Cp, T*HW)
        enc = jnp.maximum(
            jnp.dot(we_ref[...], x, preferred_element_type=jnp.float32) + be_ref[...], 0.0)
        kv = jnp.dot(wkv_ref[...], enc, preferred_element_type=jnp.float32) + bkv_ref[...]
        kT = kv[:D]                                                       # (D, T*HW)
        vT = kv[D:]                                                       # (D, T*HW)

        # q is identical for all T frames of this batch (slots.repeat_interleave(T, 0))
        q = (jnp.dot(s_ref[0], wq_ref[...], preferred_element_type=jnp.float32)
             + bq_ref[...])                                               # (N, D)
        logits = jnp.dot(q, kT, preferred_element_type=jnp.float32) * scale  # (N, T*HW)
        mx = jnp.max(logits, axis=0, keepdims=True)
        e = jnp.exp(logits - mx)
        attn = e / jnp.sum(e, axis=0, keepdims=True)                      # softmax over slots
        att_ref[0] = attn.astype(att_ref.dtype)                           # lane-dense (N, T*HW)

        # first-occurrence argmax over the slot axis (matches torch.argmax dim=slots)
        sid = jax.lax.broadcasted_iota(jnp.int32, (N, L), 0)
        amx = jnp.max(attn, axis=0, keepdims=True)
        seg_ref[0] = jnp.min(jnp.where(attn == amx, sid, N), axis=0,
                             keepdims=True).astype(seg_ref.dtype)

        # per-frame slot update (normalise over inputs, weighted readout, linear update)
        slots_t = []
        for t in range(T):
            a_t = attn[:, t * HW:(t + 1) * HW]                            # (N, HW)
            v_t = vT[:, t * HW:(t + 1) * HW]                              # (D, HW)
            a_n = a_t / (jnp.sum(a_t, axis=1, keepdims=True) + 1e-8)
            upd = jax.lax.dot_general(
                a_n, v_t, dimension_numbers=(((1,), (1,)), ((), ())),
                preferred_element_type=jnp.float32)                       # (N, D)
            s_t = (jnp.dot(upd, wu_ref[...], preferred_element_type=jnp.float32)
                   + bu_ref[...])                                         # (N, S)
            slots_t.append(s_t)
            slots_ref[0, t] = s_t.astype(slots_ref.dtype)

        # destination-pixel / source-pixel index grids (shared across frames)
        pd = jax.lax.broadcasted_iota(jnp.int32, (1, HW), 1)
        yd = (pd // W).astype(jnp.float32)
        xd = (pd % W).astype(jnp.float32)
        ps = jax.lax.broadcasted_iota(jnp.int32, (HW, HW), 0)
        ys = ps // W
        xs = ps % W

        for t in range(T - 1):
            # flow MLP over adjacent slot pairs, then slot->pixel flow composition
            h = jnp.maximum(
                jnp.dot(slots_t[t], w1a_ref[...], preferred_element_type=jnp.float32)
                + jnp.dot(slots_t[t + 1], w1b_ref[...], preferred_element_type=jnp.float32)
                + b1_ref[...], 0.0)                                       # (N, HID)
            sflow = (jnp.dot(h, w2_ref[...], preferred_element_type=jnp.float32)
                     + b2_ref[...]) * 20.0                                # (N, 2)
            a_t = attn[:, t * HW:(t + 1) * HW]                            # (N, HW)
            flowT = jax.lax.dot_general(
                sflow, a_t, dimension_numbers=(((0,), (0,)), ((), ())),
                preferred_element_type=jnp.float32)                       # (2, HW)
            flow_ref[0, t] = flowT.astype(flow_ref.dtype)

            # bilinear backward warp of frame t (lane-dense (Cp, HW), reused from x)
            sy = jnp.clip(yd + flowT[0:1, :], 0.0, float(H - 1))
            sx = jnp.clip(xd + flowT[1:2, :], 0.0, float(W - 1))
            y0f = jnp.floor(sy)
            x0f = jnp.floor(sx)
            wy = sy - y0f
            wx = sx - x0f
            y0 = y0f.astype(jnp.int32)
            x0 = x0f.astype(jnp.int32)
            y1 = jnp.minimum(y0 + 1, H - 1)
            x1 = jnp.minimum(x0 + 1, W - 1)
            My = ((ys == y0).astype(jnp.float32) * (1.0 - wy)
                  + (ys == y1).astype(jnp.float32) * wy)                  # (HW, HW)
            Mx = ((xs == x0).astype(jnp.float32) * (1.0 - wx)
                  + (xs == x1).astype(jnp.float32) * wx)                  # (HW, HW)
            frame = x[:, t * HW:(t + 1) * HW]                             # (Cp, HW)
            warp_ref[0, t] = jnp.dot(frame, My * Mx,
                                     preferred_element_type=jnp.float32).astype(warp_ref.dtype)

    return pl.pallas_call(
        kernel,
        out_shape=(jax.ShapeDtypeStruct((B, T, N, S), jnp.float32),
                   jax.ShapeDtypeStruct((B, N, L), jnp.float32),
                   jax.ShapeDtypeStruct((B, 1, L), jnp.int32),
                   jax.ShapeDtypeStruct((B, T - 1, 2, HW), jnp.float32),
                   jax.ShapeDtypeStruct((B, T - 1, Cp, HW), jnp.float32)),
        grid_spec=pltpu.PrefetchScalarGridSpec(
            num_scalar_prefetch=0,
            grid=(B,),
            in_specs=[
                pl.BlockSpec((1, N, S), lambda b: (b, 0, 0)),
                pl.BlockSpec((Cp, L), lambda b: (0, b)),
                pl.BlockSpec((FD, Cp), lambda b: (0, 0)),
                pl.BlockSpec((FD, 1), lambda b: (0, 0)),
                pl.BlockSpec((D2, FD), lambda b: (0, 0)),
                pl.BlockSpec((D2, 1), lambda b: (0, 0)),
                pl.BlockSpec((S, D), lambda b: (0, 0)),
                pl.BlockSpec((1, D), lambda b: (0, 0)),
                pl.BlockSpec((D, S), lambda b: (0, 0)),
                pl.BlockSpec((1, S), lambda b: (0, 0)),
                pl.BlockSpec((S, HID), lambda b: (0, 0)),
                pl.BlockSpec((S, HID), lambda b: (0, 0)),
                pl.BlockSpec((1, HID), lambda b: (0, 0)),
                pl.BlockSpec((HID, 2), lambda b: (0, 0)),
                pl.BlockSpec((1, 2), lambda b: (0, 0)),
            ],
            out_specs=(
                pl.BlockSpec((1, T, N, S), lambda b: (b, 0, 0, 0)),
                pl.BlockSpec((1, N, L), lambda b: (b, 0, 0)),
                pl.BlockSpec((1, 1, L), lambda b: (b, 0, 0)),
                pl.BlockSpec((1, T - 1, 2, HW), lambda b: (b, 0, 0, 0)),
                pl.BlockSpec((1, T - 1, Cp, HW), lambda b: (b, 0, 0, 0)),
            ),
        ),
        compiler_params=pltpu.CompilerParams(dimension_semantics=("parallel",)),
    )(slots, videoT, enc_wT, enc_b, wkvT, bkv, wq, bq, wu, bu, w1a, w1b, b1, w2, b2)


# ----------------------------------------------------------------------------
# Full forward pass, mirroring FlowPredictionOld.forward.
# ----------------------------------------------------------------------------
def flow_prediction_forward(p, video):
    B, T, H, W, C = video.shape
    N, S = p["slots_init"].shape
    FDIM = p["enc_w"].shape[1]
    D = p["wq"].shape[1]
    HW = H * W
    M = B * T * HW
    Cp = ((C + 7) // 8) * 8  # pad channels so sublanes / matmul K are aligned

    # ---- layout plumbing (host-side XLA); kernels see lane-dense slabs ----
    videoT = jnp.pad(video.reshape(M, C), ((0, 0), (0, Cp - C))).T            # (Cp, M)
    enc_wT = jnp.pad(p["enc_w"], ((0, Cp - C), (0, 0))).T                     # (FDIM, Cp)
    enc_b = p["enc_b"].reshape(FDIM, 1)
    wkvT = jnp.concatenate([p["wk"], p["wv"]], axis=1).T                      # (2D, FDIM)
    bkv = jnp.concatenate([p["bk"], p["bv"]]).reshape(2 * D, 1)
    bq = p["bq"].reshape(1, D)
    bu = p["bu"].reshape(1, S)

    # initializer + full-video slot attention (encoder/kv inlined; no kv round-trip)
    slots = video_slot_attention(videoT, enc_wT, enc_b, wkvT, bkv,
                                 p["slots_init"], p["wq"], bq, p["wu"], bu,
                                 B, T * HW)                                   # (B, N, S)

    # fused: framewise compute_attention + argmax seg + flow MLP + flow composition + warp
    HID = p["flow_w1"].shape[1]
    slots_t, att_lane, seg_lane, flow_lane, warp_lane = frame_attn_flow_warp(
        videoT, slots, enc_wT, enc_b, wkvT, bkv, p["wq"], bq, p["wu"], bu,
        p["flow_w1"][:S], p["flow_w1"][S:], p["flow_b1"].reshape(1, HID),
        p["flow_w2"], p["flow_b2"].reshape(1, 2), T, H, W)

    att_t = att_lane.reshape(B, N, T, HW).transpose(0, 2, 3, 1)               # (B, T, hw, N)
    pred_seg = seg_lane.reshape(B, T, H, W, 1)                                # int32
    pred_flow = flow_lane.reshape(B, T - 1, 2, H, W).transpose(0, 1, 3, 4, 2)  # (B,T-1,H,W,2)
    warped = warp_lane[:, :, :C].reshape(B, T - 1, C, H, W).transpose(0, 1, 3, 4, 2)
    pred_frames = jnp.concatenate([video[:, :1], warped], axis=1)             # (B, T, H, W, C)

    return pred_frames, pred_seg, pred_flow, slots_t, att_t


# ----------------------------------------------------------------------------
# Deterministic parameter init.
# ----------------------------------------------------------------------------
def make_params(key, C, FDIM, N, S, D, HID):
    ks = jax.random.split(key, 16)

    def rnd(i, shape, scale):
        return scale * jax.random.normal(ks[i], shape, jnp.float32)

    return {
        "enc_w": rnd(0, (C, FDIM), 1.0 / math.sqrt(C)),
        "enc_b": rnd(1, (FDIM,), 0.02),
        "slots_init": rnd(2, (N, S), 1.0),
        "wq": rnd(3, (S, D), 1.0 / math.sqrt(S)),
        "bq": rnd(4, (D,), 0.02),
        "wk": rnd(5, (FDIM, D), 1.0 / math.sqrt(FDIM)),
        "bk": rnd(6, (D,), 0.02),
        "wv": rnd(7, (FDIM, D), 1.0 / math.sqrt(FDIM)),
        "bv": rnd(8, (D,), 0.02),
        "wu": rnd(9, (D, S), 1.0 / math.sqrt(D)),
        "bu": rnd(10, (S,), 0.02),
        "flow_w1": rnd(11, (2 * S, HID), 1.0 / math.sqrt(2 * S)),
        "flow_b1": rnd(12, (HID,), 0.02),
        "flow_w2": rnd(13, (HID, 2), 0.05),
        "flow_b2": rnd(14, (2,), 0.0),
    }


if __name__ == "__main__":
    B, T, H, W, C = 2, 4, 16, 16, 3
    N, S, D, FDIM, HID = 8, 32, 32, 32, 64

    key = jax.random.PRNGKey(0)
    pkey, vkey = jax.random.split(key)
    params = make_params(pkey, C, FDIM, N, S, D, HID)
    video = jax.random.normal(vkey, (B, T, H, W, C), jnp.float32)

    outs = flow_prediction_forward(params, video)
    outs = jax.block_until_ready(outs)
    pred_frames, pred_seg, pred_flow, slots_t, att_t = outs

    assert pred_frames.shape == (B, T, H, W, C)
    assert pred_seg.shape == (B, T, H, W, 1) and pred_seg.dtype == jnp.int32
    assert pred_flow.shape == (B, T - 1, H, W, 2)
    assert slots_t.shape == (B, T, N, S)
    assert att_t.shape == (B, T, H * W, N)
    assert bool(jnp.all((pred_seg >= 0) & (pred_seg < N)))
    assert all(bool(jnp.all(jnp.isfinite(o))) for o in (pred_frames, pred_flow, slots_t, att_t))

    print("KERNEL_OK")
</pallas_src>

<mosaic_0001>
module attributes {stable_mosaic.version = 11 : i64} {
  func.func @kernel(%arg0: i32, %arg1: i32, %arg2: memref<8x32xf32, #tpu.memory_space<vmem>>, %arg3: memref<32x32xf32, #tpu.memory_space<vmem>>, %arg4: memref<1x32xf32, #tpu.memory_space<vmem>>, %arg5: memref<8x1024xf32, #tpu.memory_space<vmem>>, %arg6: memref<32x8xf32, #tpu.memory_space<vmem>>, %arg7: memref<32x1xf32, #tpu.memory_space<vmem>>, %arg8: memref<64x32xf32, #tpu.memory_space<vmem>>, %arg9: memref<64x1xf32, #tpu.memory_space<vmem>>, %arg10: memref<32x32xf32, #tpu.memory_space<vmem>>, %arg11: memref<1x32xf32, #tpu.memory_space<vmem>>, %arg12: memref<1x8x32xf32, #tpu.memory_space<vmem>>, %arg13: memref<8x32xf32, #tpu.memory_space<vmem>>, %arg14: memref<8x32xf32, #tpu.memory_space<vmem>>, %arg15: memref<8x1xf32, #tpu.memory_space<vmem>>) attributes {dimension_semantics = [#tpu.dimension_semantics<parallel>, #tpu.dimension_semantics<arbitrary>], iteration_bounds = array<i64: 2, 1>, scalar_prefetch = 0 : i64, scratch_operands = 3 : i64, tpu.core_type = #tpu.core_type<tc>, window_params = [{pipeline_mode = #tpu.pipeline_mode<synchronous>, transform_indices = @transform_0, window_bounds = array<i64: 8, 32>}, {pipeline_mode = #tpu.pipeline_mode<synchronous>, transform_indices = @transform_1, window_bounds = array<i64: 32, 32>}, {pipeline_mode = #tpu.pipeline_mode<synchronous>, transform_indices = @transform_2, window_bounds = array<i64: 1, 32>}, {transform_indices = @transform_3, window_bounds = array<i64: 8, 1024>}, {pipeline_mode = #tpu.pipeline_mode<synchronous>, transform_indices = @transform_4, window_bounds = array<i64: 32, 8>}, {pipeline_mode = #tpu.pipeline_mode<synchronous>, transform_indices = @transform_5, window_bounds = array<i64: 32, 1>}, {pipeline_mode = #tpu.pipeline_mode<synchronous>, transform_indices = @transform_6, window_bounds = array<i64: 64, 32>}, {pipeline_mode = #tpu.pipeline_mode<synchronous>, transform_indices = @transform_7, window_bounds = array<i64: 64, 1>}, {pipeline_mode = #tpu.pipeline_mode<synchronous>, transform_indices = @transform_8, window_bounds = array<i64: 32, 32>}, {pipeline_mode = #tpu.pipeline_mode<synchronous>, transform_indices = @transform_9, window_bounds = array<i64: 1, 32>}, {transform_indices = @transform_10, window_bounds = array<i64: 1, 8, 32>}]} {
    %c0_i32 = arith.constant 0 : i32
    %0 = arith.cmpi eq, %arg1, %c0_i32 : i32
    %1 = arith.extui %0 : i1 to i32
    %c0_i32_0 = arith.constant 0 : i32
    %2 = arith.cmpi ne, %1, %c0_i32_0 : i32
    scf.if %2 {
      %cst_30 = arith.constant 0.000000e+00 : f32
      %43 = vector.broadcast %cst_30 : f32 to vector<8x32xf32>
      %c0_31 = arith.constant 0 : index
      %c0_32 = arith.constant 0 : index
      %44 = vector.load %arg14[%c0_31, %c0_32] : memref<8x32xf32, #tpu.memory_space<vmem>>, vector<8x32xf32>
      tpu.vector_store %arg14[%c0_31, %c0_32], %43 {strides = array<i32>} : memref<8x32xf32, #tpu.memory_space<vmem>>, vector<8x32xf32>,
      %cst_33 = arith.constant 0.000000e+00 : f32
      %45 = vector.broadcast %cst_33 : f32 to vector<8x1xf32>
      %c0_34 = arith.constant 0 : index
      %c0_35 = arith.constant 0 : index
      %46 = vector.load %arg15[%c0_34, %c0_35] : memref<8x1xf32, #tpu.memory_space<vmem>>, vector<8x1xf32>
      tpu.vector_store %arg15[%c0_34, %c0_35], %45 {strides = array<i32>} : memref<8x1xf32, #tpu.memory_space<vmem>>, vector<8x1xf32>,
      %c0_36 = arith.constant 0 : index
      %c0_37 = arith.constant 0 : index
      %47 = vector.load %arg2[%c0_36, %c0_37] : memref<8x32xf32, #tpu.memory_space<vmem>>, vector<8x32xf32>
      %c0_38 = arith.constant 0 : index
      %c0_39 = arith.constant 0 : index
      %48 = vector.load %arg3[%c0_38, %c0_39] : memref<32x32xf32, #tpu.memory_space<vmem>>, vector<32x32xf32>
      %cst_40 = arith.constant dense<0.000000e+00> : vector<8x32xf32>
      %49 = tpu.matmul %47, %48, %cst_40 {dimension_numbers = #tpu.dot_dimension_numbers<[1], [0], [0], [1], [0, 0, 1, 1], [], []>} : vector<8x32xf32>, vector<32x32xf32>, vector<8x32xf32> -> vector<8x32xf32>
      %c0_41 = arith.constant 0 : index
      %c0_42 = arith.constant 0 : index
      %50 = vector.load %arg4[%c0_41, %c0_42] : memref<1x32xf32, #tpu.memory_space<vmem>>, vector<1x32xf32>
      %51 = vector.broadcast %50 : vector<1x32xf32> to vector<8x32xf32>
      %52 = arith.addf %49, %51 : vector<8x32xf32>
      %c0_43 = arith.constant 0 : index
      %c0_44 = arith.constant 0 : index
      %53 = vector.load %arg13[%c0_43, %c0_44] : memref<8x32xf32, #tpu.memory_space<vmem>>, vector<8x32xf32>
      tpu.vector_store %arg13[%c0_43, %c0_44], %52 {strides = array<i32>} : memref<8x32xf32, #tpu.memory_space<vmem>>, vector<8x32xf32>,
    } else {
    }
    %c0 = arith.constant 0 : index
    %c0_1 = arith.constant 0 : index
    %3 = vector.load %arg6[%c0, %c0_1] : memref<32x8xf32, #tpu.memory_space<vmem>>, vector<32x8xf32>
    %c0_2 = arith.constant 0 : index
    %c0_3 = arith.constant 0 : index
    %4 = vector.load %arg5[%c0_2, %c0_3] : memref<8x1024xf32, #tpu.memory_space<vmem>>, vector<8x1024xf32>
    %cst = arith.constant dense<0.000000e+00> : vector<32x1024xf32>
    %5 = tpu.matmul %3, %4, %cst {dimension_numbers = #tpu.dot_dimension_numbers<[1], [0], [0], [1], [0, 0, 1, 1], [], []>} : vector<32x8xf32>, vector<8x1024xf32>, vector<32x1024xf32> -> vector<32x1024xf32>
    %c0_4 = arith.constant 0 : index
    %c0_5 = arith.constant 0 : index
    %6 = vector.load %arg7[%c0_4, %c0_5] : memref<32x1xf32, #tpu.memory_space<vmem>>, vector<32x1xf32>
    %7 = vector.broadcast %6 : vector<32x1xf32> to vector<32x1024xf32>
    %8 = arith.addf %5, %7 : vector<32x1024xf32>
    %cst_6 = arith.constant 0.000000e+00 : f32
    %9 = vector.broadcast %cst_6 : f32 to vector<32x1024xf32>
    %10 = arith.maximumf %8, %9 : vector<32x1024xf32>
    %c0_7 = arith.constant 0 : index
    %c0_8 = arith.constant 0 : index
    %11 = vector.load %arg8[%c0_7, %c0_8] : memref<64x32xf32, #tpu.memory_space<vmem>>, vector<64x32xf32>
    %cst_9 = arith.constant dense<0.000000e+00> : vector<64x1024xf32>
    %12 = tpu.matmul %11, %10, %cst_9 {dimension_numbers = #tpu.dot_dimension_numbers<[1], [0], [0], [1], [0, 0, 1, 1], [], []>} : vector<64x32xf32>, vector<32x1024xf32>, vector<64x1024xf32> -> vector<64x1024xf32>
    %c0_10 = arith.constant 0 : index
    %c0_11 = arith.constant 0 : index
    %13 = vector.load %arg9[%c0_10, %c0_11] : memref<64x1xf32, #tpu.memory_space<vmem>>, vector<64x1xf32>
    %14 = vector.broadcast %13 : vector<64x1xf32> to vector<64x1024xf32>
    %15 = arith.addf %12, %14 : vector<64x1024xf32>
    %16 = vector.extract_strided_slice %15 {offsets = [0, 0], sizes = [32, 1024], strides = [1, 1]} : vector<64x1024xf32> to vector<32x1024xf32>
    %17 = vector.extract_strided_slice %15 {offsets = [32, 0], sizes = [32, 1024], strides = [1, 1]} : vector<64x1024xf32> to vector<32x1024xf32>
    %c0_12 = arith.constant 0 : index
    %c0_13 = arith.constant 0 : index
    %18 = vector.load %arg13[%c0_12, %c0_13] : memref<8x32xf32, #tpu.memory_space<vmem>>, vector<8x32xf32>
    %cst_14 = arith.constant dense<0.000000e+00> : vector<8x1024xf32>
    %19 = tpu.matmul %18, %16, %cst_14 {dimension_numbers = #tpu.dot_dimension_numbers<[1], [0], [0], [1], [0, 0, 1, 1], [], []>} : vector<8x32xf32>, vector<32x1024xf32>, vector<8x1024xf32> -> vector<8x1024xf32>
    %cst_15 = arith.constant 0.176776692 : f32
    %20 = vector.broadcast %cst_15 : f32 to vector<8x1024xf32>
    %21 = arith.mulf %19, %20 : vector<8x1024xf32>
    %cst_16 = arith.constant dense<0xFF800000> : vector<1024xf32>
    %22 = vector.multi_reduction <maximumf>, %21, %cst_16 [0] : vector<8x1024xf32> to vector<1024xf32>
    %23 = vector.shape_cast %22 : vector<1024xf32> to vector<1x1024xf32>
    %24 = vector.broadcast %23 : vector<1x1024xf32> to vector<8x1024xf32>
    %25 = arith.subf %21, %24 : vector<8x1024xf32>
    %26 = math.exp %25 : vector<8x1024xf32>
    %cst_17 = arith.constant dense<0.000000e+00> : vector<1024xf32>
    %27 = vector.multi_reduction <add>, %26, %cst_17 [0] : vector<8x1024xf32> to vector<1024xf32>
    %28 = vector.shape_cast %27 : vector<1024xf32> to vector<1x1024xf32>
    %29 = vector.broadcast %28 : vector<1x1024xf32> to vector<8x1024xf32>
    %30 = arith.divf %26, %29 : vector<8x1024xf32>
    %c0_18 = arith.constant 0 : index
    %c0_19 = arith.constant 0 : index
    %31 = vector.load %arg14[%c0_18, %c0_19] : memref<8x32xf32, #tpu.memory_space<vmem>>, vector<8x32xf32>
    %cst_20 = arith.constant dense<0.000000e+00> : vector<8x32xf32>
    %32 = tpu.matmul %30, %17, %cst_20 {dimension_numbers = #tpu.dot_dimension_numbers<[1], [1], [0], [0], [0, 0, 1, 0], [], []>} : vector<8x1024xf32>, vector<32x1024xf32>, vector<8x32xf32> -> vector<8x32xf32>
    %33 = arith.addf %31, %32 : vector<8x32xf32>
    %c0_21 = arith.constant 0 : index
    %c0_22 = arith.constant 0 : index
    %34 = vector.load %arg14[%c0_21, %c0_22] : memref<8x32xf32, #tpu.memory_space<vmem>>, vector<8x32xf32>
    tpu.vector_store %arg14[%c0_21, %c0_22], %33 {strides = array<i32>} : memref<8x32xf32, #tpu.memory_space<vmem>>, vector<8x32xf32>,
    %c0_23 = arith.constant 0 : index
    %c0_24 = arith.constant 0 : index
    %35 = vector.load %arg15[%c0_23, %c0_24] : memref<8x1xf32, #tpu.memory_space<vmem>>, vector<8x1xf32>
    %cst_25 = arith.constant dense<0.000000e+00> : vector<8xf32>
    %36 = vector.multi_reduction <add>, %30, %cst_25 [1] : vector<8x1024xf32> to vector<8xf32>
    %37 = vector.shape_cast %36 : vector<8xf32> to vector<8x1xf32>
    %38 = arith.addf %35, %37 : vector<8x1xf32>
    %c0_26 = arith.constant 0 : index
    %c0_27 = arith.constant 0 : index
    %39 = vector.load %arg15[%c0_26, %c0_27] : memref<8x1xf32, #tpu.memory_space<vmem>>, vector<8x1xf32>
    tpu.vector_store %arg15[%c0_26, %c0_27], %38 {strides = array<i32>} : memref<8x1xf32, #tpu.memory_space<vmem>>, vector<8x1xf32>,
    %c0_i32_28 = arith.constant 0 : i32
    %40 = arith.cmpi eq, %arg1, %c0_i32_28 : i32
    %41 = arith.extui %40 : i1 to i32
    %c0_i32_29 = arith.constant 0 : i32
    %42 = arith.cmpi ne, %41, %c0_i32_29 : i32
    scf.if %42 {
      %c0_30 = arith.constant 0 : index
      %c0_31 = arith.constant 0 : index
      %43 = vector.load %arg14[%c0_30, %c0_31] : memref<8x32xf32, #tpu.memory_space<vmem>>, vector<8x32xf32>
      %c0_32 = arith.constant 0 : index
      %c0_33 = arith.constant 0 : index
      %44 = vector.load %arg15[%c0_32, %c0_33] : memref<8x1xf32, #tpu.memory_space<vmem>>, vector<8x1xf32>
      %cst_34 = arith.constant 9.99999993E-9 : f32
      %45 = vector.broadcast %cst_34 : f32 to vector<8x1xf32>
      %46 = arith.addf %44, %45 : vector<8x1xf32>
      %47 = vector.broadcast %46 : vector<8x1xf32> to vector<8x32xf32>
      %48 = arith.divf %43, %47 : vector<8x32xf32>
      %c0_35 = arith.constant 0 : index
      %c0_36 = arith.constant 0 : index
      %49 = vector.load %arg10[%c0_35, %c0_36] : memref<32x32xf32, #tpu.memory_space<vmem>>, vector<32x32xf32>
      %cst_37 = arith.constant dense<0.000000e+00> : vector<8x32xf32>
      %50 = tpu.matmul %48, %49, %cst_37 {dimension_numbers = #tpu.dot_dimension_numbers<[1], [0], [0], [1], [0, 0, 1, 1], [], []>} : vector<8x32xf32>, vector<32x32xf32>, vector<8x32xf32> -> vector<8x32xf32>
      %c0_38 = arith.constant 0 : index
      %c0_39 = arith.constant 0 : index
      %51 = vector.load %arg11[%c0_38, %c0_39] : memref<1x32xf32, #tpu.memory_space<vmem>>, vector<1x32xf32>
      %52 = vector.broadcast %51 : vector<1x32xf32> to vector<8x32xf32>
      %53 = arith.addf %50, %52 : vector<8x32xf32>
      %c0_40 = arith.constant 0 : index
      %c0_41 = arith.constant 0 : index
      %c0_42 = arith.constant 0 : index
      %54 = vector.load %arg12[%c0_40, %c0_41, %c0_42] : memref<1x8x32xf32, #tpu.memory_space<vmem>>, vector<1x8x32xf32>
      %55 = vector.shape_cast %54 : vector<1x8x32xf32> to vector<8x32xf32>
      %56 = vector.shape_cast %53 : vector<8x32xf32> to vector<1x8x32xf32>
      tpu.vector_store %arg12[%c0_40, %c0_41, %c0_42], %56 {strides = array<i32>} : memref<1x8x32xf32, #tpu.memory_space<vmem>>, vector<1x8x32xf32>,
    } else {
    }
    return
  }
  func.func @transform_0(%arg0: i32, %arg1: i32) -> (i32, i32) {
    %c0_i32 = arith.constant 0 : i32
    %c0_i32_0 = arith.constant 0 : i32
    %c0_i32_1 = arith.constant 0 : i32
    return %c0_i32, %c0_i32_0 : i32, i32
  }
  func.func @transform_1(%arg0: i32, %arg1: i32) -> (i32, i32) {
    %c0_i32 = arith.constant 0 : i32
    %c0_i32_0 = arith.constant 0 : i32
    %c0_i32_1 = arith.constant 0 : i32
    return %c0_i32, %c0_i32_0 : i32, i32
  }
  func.func @transform_2(%arg0: i32, %arg1: i32) -> (i32, i32) {
    %c0_i32 = arith.constant 0 : i32
    %c0_i32_0 = arith.constant 0 : i32
    %c0_i32_1 = arith.constant 0 : i32
    return %c0_i32, %c0_i32_0 : i32, i32
  }
  func.func @transform_3(%arg0: i32, %arg1: i32) -> (i32, i32) {
    %c1_i32 = arith.constant 1 : i32
    %0 = arith.muli %arg0, %c1_i32 : i32
    %1 = arith.addi %0, %arg1 : i32
    %c0_i32 = arith.constant 0 : i32
    %c0_i32_0 = arith.constant 0 : i32
    return %c0_i32, %1 : i32, i32
  }
  func.func @transform_4(%arg0: i32, %arg1: i32) -> (i32, i32) {
    %c0_i32 = arith.constant 0 : i32
    %c0_i32_0 = arith.constant 0 : i32
    %c0_i32_1 = arith.constant 0 : i32
    return %c0_i32, %c0_i32_0 : i32, i32
  }
  func.func @transform_5(%arg0: i32, %arg1: i32) -> (i32, i32) {
    %c0_i32 = arith.constant 0 : i32
    %c0_i32_0 = arith.constant 0 : i32
    %c0_i32_1 = arith.constant 0 : i32
    return %c0_i32, %c0_i32_0 : i32, i32
  }
  func.func @transform_6(%arg0: i32, %arg1: i32) -> (i32, i32) {
    %c0_i32 = arith.constant 0 : i32
    %c0_i32_0 = arith.constant 0 : i32
    %c0_i32_1 = arith.constant 0 : i32
    return %c0_i32, %c0_i32_0 : i32, i32
  }
  func.func @transform_7(%arg0: i32, %arg1: i32) -> (i32, i32) {
    %c0_i32 = arith.constant 0 : i32
    %c0_i32_0 = arith.constant 0 : i32
    %c0_i32_1 = arith.constant 0 : i32
    return %c0_i32, %c0_i32_0 : i32, i32
  }
  func.func @transform_8(%arg0: i32, %arg1: i32) -> (i32, i32) {
    %c0_i32 = arith.constant 0 : i32
    %c0_i32_0 = arith.constant 0 : i32
    %c0_i32_1 = arith.constant 0 : i32
    return %c0_i32, %c0_i32_0 : i32, i32
  }
  func.func @transform_9(%arg0: i32, %arg1: i32) -> (i32, i32) {
    %c0_i32 = arith.constant 0 : i32
    %c0_i32_0 = arith.constant 0 : i32
    %c0_i32_1 = arith.constant 0 : i32
    return %c0_i32, %c0_i32_0 : i32, i32
  }
  func.func @transform_10(%arg0: i32, %arg1: i32) -> (i32, i32, i32) {
    %c0_i32 = arith.constant 0 : i32
    %c0_i32_0 = arith.constant 0 : i32
    %c0_i32_1 = arith.constant 0 : i32
    return %arg0, %c0_i32, %c0_i32_0 : i32, i32, i32
  }
}

</mosaic_0001>

<bundles_post_ra>
// kernel: tpu_custom_call.1
= control target key start
LH: loop header
LB: loop body
LE: loop exit
PB: predicated region body
PF: predicated region fallthrough
CT: control target
= control target key end

     0   :  { %s3427_s0 = inlined_call_operand.vmem [shape: f32[8,32], index: 0, kind: input, shape index: {}]   ;;  %s3428_s1 = inlined_call_operand.vmem [shape: f32[32,32], index: 1, kind: input, shape index: {}]   ;;  %s3429_s2 = inlined_call_operand.vmem [shape: f32[1,32], index: 2, kind: input, shape index: {}]   ;;  %s3430_s3 = inlined_call_operand.vmem [shape: f32[8,2048], index: 3, kind: input, shape index: {}]   ;;  %s3431_s4 = inlined_call_operand.vmem [shape: f32[32,8], index: 4, kind: input, shape index: {}]   ;;  %s3432_s5 = inlined_call_operand.vmem [shape: f32[32,1], index: 5, kind: input, shape index: {}]   ;;  %s3433_s6 = inlined_call_operand.vmem [shape: f32[64,32], index: 6, kind: input, shape index: {}]   ;;  %s3434_s7 = inlined_call_operand.vmem [shape: f32[64,1], index: 7, kind: input, shape index: {}]   ;;  %s3435_s8 = inlined_call_operand.vmem [shape: f32[32,32], index: 8, kind: input, shape index: {}]   ;;  %s3436_s9 = inlined_call_operand.vmem [shape: f32[1,32], index: 9, kind: input, shape index: {}]   ;;  %s3437_s10 = inlined_call_operand.hbm [shape: f32[2,8,32], index: 10, kind: output, shape index: {}]  }
   0x1   :  { %3439 = sst [smem:[#allocation9_spill]] %s3428_s1 }
   0x2   :  { %15 = vsyncpa [#allocation6], 0 }
   0x3   :  { %17 = vsyncpa [#allocation6 + $0x1], 0  ;;  %s2793_s13 = smov 0   ;;  %s2795_s14 = smov 0  }
   0x4   :  { %s2797_s15 = smov 0   ;;  %s2799_s16 = smov 0  }
   0x5   :  { %s2801_s17 = smov 0   ;;  %s2803_s18 = smov 0  }
   0x6 LB: > { %s2350_s19 = sadd.s32 4294967295, %s2731_s18   ;;  %s2351_s20 = sadd.s32 4294967294, %s2731_s18   ;;  %s2731_s18 = sphi %s2803_s18, %s23_s18   ;;  %s2727_s17 = sphi %s2801_s17, %s3449_s17   ;;  %s2723_s16 = sphi %s2799_s16, %s3448_s16   ;;  %s2719_s15 = sphi %s2797_s15, %s3447_s15   ;;  %s2715_s14 = sphi %s2795_s14, %s3446_s14   ;;  %s2711_s13 = sphi %s2793_s13, %s3445_s13  }
   0x7   : > { %s35_s21 = sadd.s32 1, %s2727_s17  ;;  %s259_s22 = sadd.s32 1, %s2719_s15 }
   0x8   : > { %p37_p0 = scmp.ge.s32.totalorder %s35_s21, 2  ;;  %p269_p1 = scmp.ne.s32.totalorder %s2719_s15, %s2715_s14 }
   0x9   : > { %p270_p2 = scmp.eq.s32.totalorder %s2350_s19, 1  ;;  %p275_p3 = scmp.ne.s32.totalorder %s2715_s14, %s2711_s13 }
   0xa   : > { %s3451_s21 = smov (%p37_p0, %s35_s21), 0  ;;  %p276_p5 = scmp.eq.s32.totalorder %s2351_s20, 1 }
   0xb   : > { %3440 = sst [smem:[#allocation8_spill]] %s3451_s21  ;;  %p2833_p4 = por %p270_p2, %p269_p1 }
   0xc   : > { %s256_s24 = ssub.s32 %s2727_s17, %s3451_s21  ;;  %p2354_p6 = scmp.ge.s32.totalorder %s2731_s18, 1 }
   0xd   : > { %p257_p7 = scmp.eq.s32.totalorder %s256_s24, 0  ;;  %p2840_p8 = por %p276_p5, %p275_p3 }
   0xe   : > { %p332_p9 = scmp.lt.s32.totalorder %s2731_s18, 3 }
   0xf   : > { %s2846_s26 = scalar_select %p257_p7, %s2719_s15, %s259_s22  }
  0x10   : > { %p333_p10 = pnand %p2354_p6, %p332_p9 }
  0x11   : > { %s3443_s1 = sld [smem:[#allocation9_spill]] (!%p333_p10)  ;;  %s2356_s19 = sshll.u32 (!%p333_p10), %s2723_s16, 3  ;;  %v2733_v3 = vmov (!%p333_p10), 0.0|0.0   ;;  %v2734_v6 = vmov (!%p333_p10), 0.0   ;;  %vm383_vm0 = vcmask (!%p333_p10), 261120   ;;  %vm2735_vm1 = vmmov (!%p333_p10), 0  }
  0x12   : > { %336 = sbr.rel (%p333_p10) target bundleno = 1330 (0x532), region = 60  ;;  %2450 = vmatprep.subr.bf16.mxu0 (!%p333_p10), %v2733_v3  ;;  %p373_p11 = scmp.lt.s32.totalorder (!%p333_p10), %s2356_s19, 15  ;;  %586 = vmatprep.mubr.f32.mxu1 (!%p333_p10), %v2734_v6  ;;  %384 = vst.msk [vmem:[#allocation3] sm:$0xff] (!%p333_p10), %vm383_vm0, %v2734_v6  ;;  %v2736_v8 = vmov (!%p333_p10), 0   ;;  %v485_v9 = vld [vmem:[%s3432_s5] sm:$0xff] (!%p333_p10)  ;;  %v487_v10 = vld [vmem:[%s3432_s5 + $0x10] sm:$0xff] (!%p333_p10) }
  0x13   : > { %2436 = vmatprep.mubr.msk.f32.mxu0 (!%p333_p10), %vm2735_vm1, %v2734_v6  ;;  %2617 = vset.pattern.permute.xlu0 (!%p333_p10), %v2736_v8  ;;  %v387_v11 = vld [vmem:[%s3427_s0] sm:$0xff] (!%p333_p10)  ;;  %v486_v13 = vld [vmem:[%s3432_s5 + $0x8] sm:$0xff] (!%p333_p10)  ;;  %vm509_vm2 = vcmask (!%p333_p10), 64512   ;;  %v488_v23 = vld [vmem:[%s3432_s5 + $0x18] sm:$0xff] (!%p333_p10)  ;;  %vm385_vm3 = vcmask (!%p333_p10), 7168   ;;  %s2415_s12 = sshll.u32 (!%p333_p10), %s2723_s16, 7 }
  0x14   : > { %491 = vperm.xlu0 (!%p333_p10), %2617, %v485_v9   ;;  %2618 = vset.pattern.permute.xlu1 (!%p333_p10), %v2736_v8  ;;  %v2883_v12 = vld [vmem:[%s3431_s4] sm:$0xff] (!%p333_p10)  ;;  %v474_v21 = vld [vmem:[%s3431_s4 + $0x8] sm:$0xff] (!%p333_p10)  ;;  %v475_v25 = vld [vmem:[%s3431_s4 + $0x10] sm:$0xff] (!%p333_p10)  ;;  %386 = vst.msk [vmem:[#allocation4] sm:$0xff] (!%p333_p10), %vm385_vm3, %v2734_v6  ;;  %s3379_s28 = scalar_lea.hbm (!%p333_p10), %s3437_s10, %s2415_s12  ;;  %s2737_s16 = smov (!%p333_p10), [#allocation5]  }
  0x15   : > { %501 = vperm.xlu1 (!%p333_p10), %2618, %v487_v10   ;;  %v918_v24 = vld [vmem:[%s3434_s7] sm:$0xff] (!%p333_p10)  ;;  %v919_v26 = vld [vmem:[%s3434_s7 + $0x8] sm:$0xff] (!%p333_p10)  ;;  %v920_v27 = vld [vmem:[%s3434_s7 + $0x10] sm:$0xff] (!%p333_p10) }
  0x16   : > { %v476_v28 = vld [vmem:[%s3431_s4 + $0x18] sm:$0xff] (!%p333_p10)  ;;  %v922_v30 = vld [vmem:[%s3434_s7 + $0x20] sm:$0xff] (!%p333_p10)  ;;  %v923_v31 = vld [vmem:[%s3434_s7 + $0x28] sm:$0xff] (!%p333_p10) }
  0x17   : > { %v388_v0 = vld [vmem:[%s3443_s1] sm:$0xff] (!%p333_p10)  ;;  %v389_v1 = vld [vmem:[%s3443_s1 + $0x8] sm:$0xff] (!%p333_p10)  ;;  %v390_v2 = vld [vmem:[%s3443_s1 + $0x10] sm:$0xff] (!%p333_p10) }
  0x18   : > { %v2451_v4 = vpack.c.bf16 (!%p333_p10), %v389_v1, %v388_v0  ;;  %v391_v5 = vld [vmem:[%s3443_s1 + $0x18] sm:$0xff] (!%p333_p10)  ;;  %496 = vperm.xlu0 (!%p333_p10), %2617, %v486_v13   ;;  %v924_v32 = vld [vmem:[%s3434_s7 + $0x30] sm:$0xff] (!%p333_p10)  ;;  %v2358_v35 = vld [vmem:[%s3429_s2] ss:$0 sm:$0xff] (!%p333_p10) }
  0x19   : > { %v2454_v7 = vpack.c.bf16 %v391_v5, %v390_v2  ;;  %s3453_s19 = smov (!%p373_p11, %s2356_s19), 15  ;;  %506 = vperm.xlu1 %2618, %v488_v23   ;;  %v921_v29 = vld [vmem:[%s3434_s7 + $0x18] sm:$0xff] }
  0x1a   : > { %2452 = vmatpush3.bf16.msra.mxu0 %v2451_v4  ;;  %s2357_s30 = sshll.u32 %s3453_s19, 3  ;;  %v925_v33 = vld [vmem:[%s3434_s7 + $0x38] sm:$0xff]  ;;  %s368_s19 = sand.u32 1, %s2715_s14  }
  0x1b   : > { %2453 = vmatprep.subr.bf16.mxu0 %v2733_v3  ;;  %s376_s20 = scalar_lea.vmem %s3430_s3, %s2357_s30  ;;  %s2355_s29 = sshll.u32 %s368_s19, 3 }
  0x1c   : > { %v478_v14 = vld [vmem:[%s376_s20 + $0x8] sm:$0xff]  ;;  %v477_v15 = vld [vmem:[%s376_s20] sm:$0xff]  ;;  %v480_v16 = vld [vmem:[%s376_s20 + $0x18] sm:$0xff]  ;;  %928 = vperm.xlu0 %2617, %v918_v24   ;;  %s370_s22 = scalar_lea.vmem [#allocation5], %s2355_s29  ;;  %s2270_s1 = scalar_lea.sflag [#allocation6], %s368_s19 }
  0x1d   : > { %522 = vmatprep.subr.mxu1 %v478_v14  ;;  %v479_v17 = vld [vmem:[%s376_s20 + $0x10] sm:$0xff]  ;;  %v482_v18 = vld [vmem:[%s376_s20 + $0x28] sm:$0xff]  ;;  %v481_v19 = vld [vmem:[%s376_s20 + $0x20] sm:$0xff]  ;;  %933 = vperm.xlu1 %2618, %v919_v26   ;;  %s2657_s29 = sshll.u32 %s2737_s16, 4  ;;  %s2658_s29 = int_to_ptr.vmem [resolvable:$false] %s2657_s29 }
  0x1e   : > { %2455 = vmatpush3.bf16.msra.mxu0 %v2454_v7  ;;  %523 = vmatpush1.msra.mxu1 %v477_v15  ;;  %v484_v20 = vld [vmem:[%s376_s20 + $0x38] sm:$0xff]  ;;  %v483_v22 = vld [vmem:[%s376_s20 + $0x30] sm:$0xff]  ;;  %s2283_s20 = sshll.u32 %s370_s22, 4  ;;  %s2659_s30 = scalar_lea.vmem %s2658_s29, 256  ;;  %s3381_s20 = int_to_ptr.vmem [resolvable:$true] %s2283_s20 }
  0x1f   : > { %611 = vmatprep.subr.mxu0 %v480_v16  ;;  %2360 = vmatmul.mubr.msk.f32.vlgmr.msra.gmra.mrb[0].mxu1 %vm509_vm2, %v2883_v12  ;;  %s2653_s21 = scalar_lea.vmem %s3381_s20, 128  ;;  %p2660_p1 = scmp.lt.s32.totalorder %s3381_s20, %s2658_s29 }
  0x20   : > { %592 = vmatprep.mubr.f32.mxu1 %v2734_v6  ;;  %700 = vmatprep.subr.mxu1 %v482_v18  ;;  %p2654_p12 = scmp.ne.s32.totalorder %s3381_s20, %s2653_s21  ;;  %p2661_p2 = scmp.lt.s32.totalorder %s2659_s30, %s2653_s21 }
  0x21   : > { %2437 = vmatmul.mubr.msk.f32.vlgmr.msra.gmra.mrb[0].mxu0 %vm383_vm0, %v387_v11  ;;  %701 = vmatpush1.msra.mxu1 %v481_v19 }
  0x22   : > { %612 = vmatpush1.msra.mxu0 %v479_v17  ;;  %675 = vmatprep.mubr.f32.mxu0 %v2734_v6  ;;  %p2655_p13 = pnand %p2654_p12, %p2833_p4  ;;  %p2662_p3 = por %p2661_p2, %p2660_p1 }
  0x23   : > { %789 = vmatprep.subr.mxu0 %v484_v20  ;;  %2361 = vmatmul.mubr.msk.f32.gmra.mrb[2].mxu1 %vm509_vm2, %v474_v21 }
  0x24   : > { %598 = vmatprep.mubr.f32.mxu1 %v2734_v6  ;;  %938 = vperm.xlu0 %2617, %v920_v27   ;;  %p2656_p0 = pneg %p2655_p13 }
  0x25   : > { %2364 = vmatmul.mubr.msk.f32.vlgmr.msra.gmra.mrb[2].mxu0 %vm509_vm2, %v2883_v12  ;;  %943 = vperm.xlu1 %2618, %v921_v29  }
  0x26   : > { %681 = vmatprep.mubr.f32.mxu0 %v2734_v6  ;;  %790 = vmatpush1.msra.mxu0 %v483_v22  ;;  %p2663_p5 = pnand %p2662_p3, %p2656_p0 }
  0x27   : > { %2362 = vmatmul.mubr.msk.f32.gmra.mrb[4].mxu1 %vm509_vm2, %v475_v25 }
  0x28   : > { %604 = vmatprep.mubr.f32.mxu1 %v2734_v6  ;;  %948 = vperm.xlu0 %2617, %v922_v30  }
  0x29   : > { %2365 = vmatmul.mubr.msk.f32.gmra.mrb[4].mxu0 %vm509_vm2, %v474_v21  ;;  %953 = vperm.xlu1 %2618, %v923_v31  }
  0x2a   : > { %687 = vmatprep.mubr.f32.mxu0 %v2734_v6 }
  0x2b   : > { %2363 = vmatmul.mubr.msk.f32.gmra.mrb[6].mxu1 %vm509_vm2, %v476_v28 }
  0x2c   : > { %764 = vmatprep.mubr.f32.mxu1 %v2734_v6  ;;  %958 = vperm.xlu0 %2617, %v924_v32  }
  0x2d   : > { %2366 = vmatmul.mubr.msk.f32.gmra.mrb[6].mxu0 %vm509_vm2, %v475_v25  ;;  %963 = vperm.xlu1 %2618, %v925_v33  }
  0x2e   : > { %693 = vmatprep.mubr.f32.mxu0 %v2734_v6 }
  0x2f   : > { %2368 = vmatmul.mubr.msk.f32.vlgmr.msra.gmra.mrb[8].mxu1 %vm509_vm2, %v2883_v12 }
  0x30   : > { %770 = vmatprep.mubr.f32.mxu1 %v2734_v6 }
  0x31   : > { %2367 = vmatmul.mubr.msk.f32.gmra.mrb[8].mxu0 %vm509_vm2, %v476_v28 }
  0x32   : > { %853 = vmatprep.mubr.f32.mxu0 %v2734_v6 }
  0x33   : > { %2369 = vmatmul.mubr.msk.f32.gmra.mrb[10].mxu1 %vm509_vm2, %v474_v21 }
  0x34   : > { %776 = vmatprep.mubr.f32.mxu1 %v2734_v6 }
  0x35   : > { %2372 = vmatmul.mubr.msk.f32.vlgmr.msra.gmra.mrb[10].mxu0 %vm509_vm2, %v2883_v12 }
  0x36   : > { %859 = vmatprep.mubr.f32.mxu0 %v2734_v6 }
  0x37   : > { %2370 = vmatmul.mubr.msk.f32.gmra.mrb[12].mxu1 %vm509_vm2, %v475_v25 }
  0x38   : > { %782 = vmatprep.mubr.f32.mxu1 %v2734_v6 }
  0x39   : > { %2373 = vmatmul.mubr.msk.f32.gmra.mrb[12].mxu0 %vm509_vm2, %v474_v21 }
  0x3a   : > { %865 = vmatprep.mubr.f32.mxu0 %v2734_v6 }
  0x3b   : > { %2371 = vmatmul.mubr.msk.f32.gmra.mrb[14].mxu1 %vm509_vm2, %v476_v28 }
  0x3c   : > { %1055 = vmatprep.mubr.f32.mxu1 %v2734_v6 }
  0x3d   : > { %2374 = vmatmul.mubr.msk.f32.gmra.mrb[14].mxu0 %vm509_vm2, %v475_v25 }
  0x3e   : > { %871 = vmatprep.mubr.f32.mxu0 %v2734_v6 }
  0x41   : > { %2375 = vmatmul.mubr.msk.f32.gmra.mrb[16].mxu0 %vm509_vm2, %v476_v28 }
  0x42   : > { %1168 = vmatprep.mubr.f32.mxu0 %v2734_v6 }
  0x93   : > { %v2962_v34 = vpop.permute.xlu0 %491 }
  0x94   : > { %v2967_v41 = vpop.permute.xlu1 %501 }
  0x97   : > { %v2969_v42 = vpop.permute.xlu0 %496 }
  0x98   : > { %v2980_v1 = vpop.permute.xlu1 %506 }
  0xf2   : > { %v588_v36 = vpop.f32.mrb[0].mxu1 }
  0xf3   : > { %v590_v38 = vpop.f32.mrb[1].mxu1  ;;  %v589_v43 = vadd.f32 %v588_v36, %v2962_v34 }
  0xf4   : > { %v468_v37 = vpop.f32.mrb[0].mxu0  ;;  %v591_v44 = vadd.f32 %v590_v38, %v2962_v34 }
  0xf5   : > { %v469_v39 = vadd.f32 %v2358_v35, %v468_v37  ;;  %v2438_v40 = vpop.f32.mrb[1].mxu0  ;;  %v878_v51 = vmax.f32 %v589_v43, 0.0 }
  0xf6   : > { %v594_v45 = vpop.f32.mrb[2].mxu1  ;;  %v879_v54 = vmax.f32 %v591_v44, 0.0 }
  0xf7   : > { %472 = vst.msk [vmem:[#allocation2] sm:$0xff] %vm383_vm0, %v469_v39  ;;  %v595_v47 = vadd.f32 %v594_v45, %v2969_v42  ;;  %v596_v48 = vpop.f32.mrb[3].mxu1 }
  0xf8   : > { %v677_v46 = vpop.f32.mrb[2].mxu0  ;;  %v597_v50 = vadd.f32 %v596_v48, %v2969_v42 }
  0xf9   : > { %v679_v49 = vpop.f32.mrb[3].mxu0  ;;  %v886_v52 = vmax.f32 %v595_v47, 0.0  ;;  %v678_v53 = vadd.f32 %v677_v46, %v2962_v34  ;;  %v2996_v47 = vld [vmem:[%s3433_s6] sm:$0xff] }
  0xfa   : > { %v887_v55 = vmax.f32 %v597_v50, 0.0  ;;  %v680_v56 = vadd.f32 %v679_v49, %v2962_v34  ;;  %v600_v57 = vpop.f32.mrb[4].mxu1 }
  0xfb   : > { %v2458_v59 = vpack.c.bf16 %v886_v52, %v878_v51  ;;  %v602_v61 = vpop.f32.mrb[5].mxu1  ;;  %v880_v2 = vmax.f32 %v678_v53, 0.0  ;;  %v601_v4 = vadd.f32 %v600_v57, %v2967_v41 }
  0xfc   : > { %v683_v58 = vpop.f32.mrb[4].mxu0  ;;  %v2456_v63 = vpack.c.bf16 %v887_v55, %v879_v54  ;;  %v881_v7 = vmax.f32 %v680_v56, 0.0  ;;  %v603_v8 = vadd.f32 %v602_v61, %v2967_v41 }
  0xfd   : > { %v684_v60 = vadd.f32 %v683_v58, %v2969_v42  ;;  %v685_v62 = vpop.f32.mrb[5].mxu0  ;;  %v894_v18 = vmax.f32 %v601_v4, 0.0 }
  0xfe   : > { %v686_v0 = vadd.f32 %v685_v62, %v2969_v42  ;;  %v606_v10 = vpop.f32.mrb[6].mxu1  ;;  %2457 = vmatprep.subr.bf16.mxu1 %v2456_v63  ;;  %v895_v21 = vmax.f32 %v603_v8, 0.0  ;;  %v3008_v62 = vld [vmem:[%s3433_s6 + $0x8] sm:$0xff] }
  0xff   : > { %v888_v5 = vmax.f32 %v684_v60, 0.0  ;;  %v607_v13 = vadd.f32 %v606_v10, %v2980_v1  ;;  %v608_v14 = vpop.f32.mrb[7].mxu1  ;;  %2459 = vmatpush1.bf16.msra.mxu1 %v2458_v59 }
 0x100   : > { %v889_v9 = vmax.f32 %v686_v0, 0.0  ;;  %v689_v11 = vpop.f32.mrb[6].mxu0  ;;  %v609_v17 = vadd.f32 %v608_v14, %v2980_v1  ;;  %v3022_v14 = vld [vmem:[%s3433_s6 + $0x10] sm:$0xff] }
 0x101   : > { %v2466_v12 = vpack.c.bf16 %v888_v5, %v880_v2  ;;  %v691_v15 = vpop.f32.mrb[7].mxu0  ;;  %v902_v19 = vmax.f32 %v607_v13, 0.0  ;;  %v690_v20 = vadd.f32 %v689_v11, %v2967_v41 }
 0x102   : > { %v2464_v16 = vpack.c.bf16 %v889_v9, %v881_v7  ;;  %v903_v22 = vmax.f32 %v609_v17, 0.0  ;;  %v692_v23 = vadd.f32 %v691_v15, %v2967_v41  ;;  %v766_v25 = vpop.f32.mrb[8].mxu1 }
 0x103   : > { %v2462_v26 = vpack.c.bf16 %v902_v19, %v894_v18  ;;  %v768_v29 = vpop.f32.mrb[9].mxu1  ;;  %v896_v32 = vmax.f32 %v690_v20, 0.0  ;;  %v767_v35 = vadd.f32 %v766_v25, %v2962_v34 }
 0x104   : > { %v695_v24 = vpop.f32.mrb[8].mxu0  ;;  %2465 = vmatprep.subr.bf16.mxu0 %v2464_v16  ;;  %v2460_v30 = vpack.c.bf16 %v903_v22, %v895_v21  ;;  %v897_v36 = vmax.f32 %v692_v23, 0.0  ;;  %v769_v38 = vadd.f32 %v768_v29, %v2962_v34 }
 0x105   : > { %v696_v27 = vadd.f32 %v695_v24, %v2980_v1  ;;  %v697_v28 = vpop.f32.mrb[9].mxu0  ;;  %2467 = vmatpush1.bf16.msra.mxu0 %v2466_v12  ;;  %v882_v50 = vmax.f32 %v767_v35, 0.0 }
 0x106   : > { %v698_v31 = vadd.f32 %v697_v28, %v2980_v1  ;;  %v772_v39 = vpop.f32.mrb[10].mxu1  ;;  %2461 = vmatprep.subr.bf16.mxu1 %v2460_v30  ;;  %v883_v53 = vmax.f32 %v769_v38, 0.0  ;;  %v917_v38 = vld [vmem:[%s3433_s6 + $0x38] sm:$0xff] }
 0x107   : > { %v904_v33 = vmax.f32 %v696_v27, 0.0  ;;  %v773_v44 = vadd.f32 %v772_v39, %v2969_v42  ;;  %v774_v45 = vpop.f32.mrb[11].mxu1  ;;  %2463 = vmatpush1.bf16.msra.mxu1 %v2462_v26  ;;  %v913_v27 = vld [vmem:[%s3433_s6 + $0x18] sm:$0xff] }
 0x108   : > { %v905_v37 = vmax.f32 %v698_v31, 0.0  ;;  %v855_v40 = vpop.f32.mrb[10].mxu0  ;;  %v775_v49 = vadd.f32 %v774_v45, %v2969_v42 }
 0x109   : > { %v2470_v43 = vpack.c.bf16 %v904_v33, %v896_v32  ;;  %v857_v46 = vpop.f32.mrb[11].mxu0  ;;  %v890_v51 = vmax.f32 %v773_v44, 0.0  ;;  %v856_v52 = vadd.f32 %v855_v40, %v2962_v34  ;;  %v3114_v44 = vpop.permute.xlu1 %933 }
 0x10a   : > { %v2468_v48 = vpack.c.bf16 %v905_v37, %v897_v36  ;;  %v891_v54 = vmax.f32 %v775_v49, 0.0  ;;  %v858_v55 = vadd.f32 %v857_v46, %v2962_v34  ;;  %v778_v56 = vpop.f32.mrb[12].mxu1  ;;  %2376 = vmatmul.mubr.msk.f32.vlgmr.msra.gmra.mrb[16].mxu1 %vm383_vm0, %v2996_v47  ;;  %v915_v36 = vld [vmem:[%s3433_s6 + $0x28] sm:$0xff]  ;;  %v916_v37 = vld [vmem:[%s3433_s6 + $0x30] sm:$0xff] }
 0x10b   : > { %v2474_v58 = vpack.c.bf16 %v890_v51, %v882_v50  ;;  %v780_v60 = vpop.f32.mrb[13].mxu1  ;;  %1061 = vmatprep.mubr.f32.mxu1 %v2734_v6  ;;  %v884_v0 = vmax.f32 %v856_v52, 0.0  ;;  %v779_v2 = vadd.f32 %v778_v56, %v2967_v41 }
 0x10c   : > { %v861_v57 = vpop.f32.mrb[12].mxu0  ;;  %2469 = vmatprep.subr.bf16.mxu0 %v2468_v48  ;;  %v2472_v34 = vpack.c.bf16 %v891_v54, %v883_v53  ;;  %v885_v5 = vmax.f32 %v858_v55, 0.0  ;;  %v781_v7 = vadd.f32 %v780_v60, %v2967_v41 }
 0x10d   : > { %v862_v59 = vadd.f32 %v861_v57, %v2969_v42  ;;  %v863_v61 = vpop.f32.mrb[13].mxu0  ;;  %2471 = vmatpush1.bf16.msra.mxu0 %v2470_v43  ;;  %v898_v17 = vmax.f32 %v779_v2, 0.0  ;;  %v3112_v43 = vpop.permute.xlu0 %928 }
 0x10e   : > { %v864_v63 = vadd.f32 %v863_v61, %v2969_v42  ;;  %v784_v9 = vpop.f32.mrb[14].mxu1  ;;  %2377 = vmatmul.mubr.msk.f32.gmra.mrb[18].mxu1 %vm383_vm0, %v3008_v62  ;;  %2473 = vmatprep.subr.bf16.mxu1 %v2472_v34  ;;  %v899_v20 = vmax.f32 %v781_v7, 0.0 }
 0x10f   : > { %v892_v4 = vmax.f32 %v862_v59, 0.0  ;;  %v785_v12 = vadd.f32 %v784_v9, %v2980_v1  ;;  %v786_v42 = vpop.f32.mrb[15].mxu1  ;;  %1067 = vmatprep.mubr.f32.mxu1 %v2734_v6  ;;  %2475 = vmatpush1.bf16.msra.mxu1 %v2474_v58 }
 0x110   : > { %v893_v8 = vmax.f32 %v864_v63, 0.0  ;;  %v867_v10 = vpop.f32.mrb[14].mxu0  ;;  %2384 = vmatmul.mubr.msk.f32.vlgmr.msra.gmra.mrb[18].mxu0 %vm383_vm0, %v2996_v47  ;;  %v787_v16 = vadd.f32 %v786_v42, %v2980_v1  ;;  %v3126_v63 = vpop.permute.xlu1 %943 }
 0x111   : > { %v2482_v11 = vpack.c.bf16 %v892_v4, %v884_v0  ;;  %v869_v13 = vpop.f32.mrb[15].mxu0  ;;  %1174 = vmatprep.mubr.f32.mxu0 %v2734_v6  ;;  %v906_v18 = vmax.f32 %v785_v12, 0.0  ;;  %v868_v19 = vadd.f32 %v867_v10, %v2967_v41  ;;  %v3124_v34 = vpop.permute.xlu0 %938 }
 0x112   : > { %v2480_v15 = vpack.c.bf16 %v893_v8, %v885_v5  ;;  %v907_v21 = vmax.f32 %v787_v16, 0.0  ;;  %v870_v22 = vadd.f32 %v869_v13, %v2967_v41  ;;  %2378 = vmatmul.mubr.msk.f32.gmra.mrb[20].mxu1 %vm383_vm0, %v3022_v14 }
 0x113   : > { %v2478_v24 = vpack.c.bf16 %v906_v18, %v898_v17  ;;  %1073 = vmatprep.mubr.f32.mxu1 %v2734_v6  ;;  %v900_v29 = vmax.f32 %v868_v19, 0.0 }
 0x114   : > { %v873_v23 = vpop.f32.mrb[16].mxu0  ;;  %2385 = vmatmul.mubr.msk.f32.gmra.mrb[20].mxu0 %vm383_vm0, %v3008_v62  ;;  %2481 = vmatprep.subr.bf16.mxu0 %v2480_v15  ;;  %v2476_v28 = vpack.c.bf16 %v907_v21, %v899_v20  ;;  %v901_v31 = vmax.f32 %v870_v22, 0.0 }
 0x115   : > { %v874_v25 = vadd.f32 %v873_v23, %v2980_v1  ;;  %v875_v26 = vpop.f32.mrb[17].mxu0  ;;  %2483 = vmatpush1.bf16.msra.mxu0 %v2482_v11  ;;  %1180 = vmatprep.mubr.f32.mxu0 %v2734_v6  ;;  %v3136_v22 = vpop.permute.xlu0 %948 }
 0x116   : > { %v876_v41 = vadd.f32 %v875_v26, %v2980_v1  ;;  %2379 = vmatmul.mubr.msk.f32.gmra.mrb[22].mxu1 %vm383_vm0, %v913_v27  ;;  %2477 = vmatprep.subr.bf16.mxu1 %v2476_v28  ;;  %v914_v1 = vld [vmem:[%s3433_s6 + $0x20] sm:$0xff]  ;;  %v3138_v23 = vpop.permute.xlu1 %953 }
 0x117   : > { %v908_v30 = vmax.f32 %v874_v25, 0.0  ;;  %1079 = vmatprep.mubr.f32.mxu1 %v2734_v6  ;;  %2479 = vmatpush1.bf16.msra.mxu1 %v2478_v24 }
 0x118   : > { %v909_v32 = vmax.f32 %v876_v41, 0.0  ;;  %2386 = vmatmul.mubr.msk.f32.gmra.mrb[22].mxu0 %vm383_vm0, %v3022_v14 }
 0x119   : > { %v2486_v33 = vpack.c.bf16 %v908_v30, %v900_v29  ;;  %1186 = vmatprep.mubr.f32.mxu0 %v2734_v6 }
 0x11a   : > { %v2484_v35 = vpack.c.bf16 %v909_v32, %v901_v31  ;;  %2380 = vmatmul.mubr.msk.f32.gmra.mrb[24].mxu1 %vm383_vm0, %v914_v1  ;;  %v3146_v31 = vld [vmem:[#allocation2] sm:$0xff] }
 0x11b   : > { %1085 = vmatprep.mubr.f32.mxu1 %v2734_v6 }
 0x11c   : > { %2387 = vmatmul.mubr.msk.f32.gmra.mrb[24].mxu0 %vm383_vm0, %v913_v27  ;;  %2485 = vmatprep.subr.bf16.mxu0 %v2484_v35 }
 0x11d   : > { %2487 = vmatpush1.bf16.msra.mxu0 %v2486_v33  ;;  %1192 = vmatprep.mubr.f32.mxu0 %v2734_v6 }
 0x11e   : > { %2381 = vmatmul.mubr.msk.f32.gmra.mrb[26].mxu1 %vm383_vm0, %v915_v36 }
 0x11f   : > { %1091 = vmatprep.mubr.f32.mxu1 %v2734_v6 }
 0x120   : > { %2388 = vmatmul.mubr.msk.f32.gmra.mrb[26].mxu0 %vm383_vm0, %v914_v1 }
 0x121   : > { %1198 = vmatprep.mubr.f32.mxu0 %v2734_v6 }
 0x122   : > { %2382 = vmatmul.mubr.msk.f32.gmra.mrb[28].mxu1 %vm383_vm0, %v916_v37 }
 0x123   : > { %1097 = vmatprep.mubr.f32.mxu1 %v2734_v6 }
 0x124   : > { %2389 = vmatmul.mubr.msk.f32.gmra.mrb[28].mxu0 %vm383_vm0, %v915_v36 }
 0x125   : > { %1204 = vmatprep.mubr.f32.mxu0 %v2734_v6 }
 0x126   : > { %2383 = vmatmul.mubr.msk.f32.gmra.mrb[30].mxu1 %vm383_vm0, %v917_v38 }
 0x127   : > { %1281 = vmatprep.mubr.f32.mxu1 %v2734_v6 }
 0x128   : > { %2390 = vmatmul.mubr.msk.f32.gmra.mrb[30].mxu0 %vm383_vm0, %v916_v37 }
 0x129   : > { %1210 = vmatprep.mubr.f32.mxu0 %v2734_v6 }
 0x12a   : > { %2392 = vmatmul.mubr.msk.f32.vlgmr.msra.gmra.mrb[32].mxu1 %vm383_vm0, %v2996_v47 }
 0x12b   : > { %1287 = vmatprep.mubr.f32.mxu1 %v2734_v6 }
 0x12c   : > { %2391 = vmatmul.mubr.msk.f32.gmra.mrb[32].mxu0 %vm383_vm0, %v917_v38 }
 0x12d   : > { %1394 = vmatprep.mubr.f32.mxu0 %v2734_v6 }
 0x12e   : > { %2393 = vmatmul.mubr.msk.f32.gmra.mrb[34].mxu1 %vm383_vm0, %v3008_v62 }
 0x12f   : > { %1293 = vmatprep.mubr.f32.mxu1 %v2734_v6 }
 0x130   : > { %2400 = vmatmul.mubr.msk.f32.vlgmr.msra.gmra.mrb[34].mxu0 %vm383_vm0, %v2996_v47 }
 0x131   : > { %1400 = vmatprep.mubr.f32.mxu0 %v2734_v6 }
 0x132   : > { %2394 = vmatmul.mubr.msk.f32.gmra.mrb[36].mxu1 %vm383_vm0, %v3022_v14 }
 0x133   : > { %1299 = vmatprep.mubr.f32.mxu1 %v2734_v6 }
 0x134   : > { %2401 = vmatmul.mubr.msk.f32.gmra.mrb[36].mxu0 %vm383_vm0, %v3008_v62 }
 0x135   : > { %1406 = vmatprep.mubr.f32.mxu0 %v2734_v6 }
 0x136   : > { %2395 = vmatmul.mubr.msk.f32.gmra.mrb[38].mxu1 %vm383_vm0, %v913_v27 }
 0x137   : > { %1305 = vmatprep.mubr.f32.mxu1 %v2734_v6 }
 0x138   : > { %2402 = vmatmul.mubr.msk.f32.gmra.mrb[38].mxu0 %vm383_vm0, %v3022_v14 }
 0x139   : > { %1412 = vmatprep.mubr.f32.mxu0 %v2734_v6 }
 0x13a   : > { %2396 = vmatmul.mubr.msk.f32.gmra.mrb[40].mxu1 %vm383_vm0, %v914_v1 }
 0x13b   : > { %1311 = vmatprep.mubr.f32.mxu1 %v2734_v6 }
 0x13c   : > { %2403 = vmatmul.mubr.msk.f32.gmra.mrb[40].mxu0 %vm383_vm0, %v913_v27 }
 0x13d   : > { %1418 = vmatprep.mubr.f32.mxu0 %v2734_v6 }
 0x13e   : > { %2397 = vmatmul.mubr.msk.f32.gmra.mrb[42].mxu1 %vm383_vm0, %v915_v36 }
 0x13f   : > { %1317 = vmatprep.mubr.f32.mxu1 %v2734_v6 }
 0x140   : > { %2404 = vmatmul.mubr.msk.f32.gmra.mrb[42].mxu0 %vm383_vm0, %v914_v1 }
 0x141   : > { %1424 = vmatprep.mubr.f32.mxu0 %v2734_v6 }
 0x142   : > { %2398 = vmatmul.mubr.msk.f32.gmra.mrb[44].mxu1 %vm383_vm0, %v916_v37 }
 0x143   : > { %1323 = vmatprep.mubr.f32.mxu1 %v2734_v6 }
 0x144   : > { %2405 = vmatmul.mubr.msk.f32.gmra.mrb[44].mxu0 %vm383_vm0, %v915_v36 }
 0x145   : > { %1430 = vmatprep.mubr.f32.mxu0 %v2734_v6 }
 0x146   : > { %2399 = vmatmul.mubr.msk.f32.gmra.mrb[46].mxu1 %vm383_vm0, %v917_v38 }
 0x147   : > { %1511 = vmatprep.mubr.f32.mxu1 %v2734_v6 }
 0x148   : > { %2406 = vmatmul.mubr.msk.f32.gmra.mrb[46].mxu0 %vm383_vm0, %v916_v37 }
 0x149   : > { %1436 = vmatprep.mubr.f32.mxu0 %v2734_v6 }
 0x14c   : > { %2407 = vmatmul.mubr.msk.f32.gmra.mrb[48].mxu0 %vm383_vm0, %v917_v38 }
 0x14d   : > { %1653 = vmatprep.mubr.f32.mxu0 %v2734_v6 }
 0x1dd   : > { %v1057_v39 = vpop.f32.mrb[16].mxu1 }
 0x1de   : > { %v1059_v40 = vpop.f32.mrb[17].mxu1  ;;  %v1058_v47 = vadd.f32 %v1057_v39, %v3112_v43 }
 0x1df   : > { %v1060_v51 = vadd.f32 %v1059_v40, %v3112_v43 }
 0x1e1   : > { %v1063_v45 = vpop.f32.mrb[18].mxu1 }
 0x1e2   : > { %v1064_v48 = vadd.f32 %v1063_v45, %v3114_v44  ;;  %v1065_v49 = vpop.f32.mrb[19].mxu1 }
 0x1e3   : > { %v1170_v46 = vpop.f32.mrb[18].mxu0  ;;  %v1066_v52 = vadd.f32 %v1065_v49, %v3114_v44  ;;  %v3175_v49 = vpop.permute.xlu1 %963 }
 0x1e4   : > { %v1172_v50 = vpop.f32.mrb[19].mxu0  ;;  %v2490_v53 = vpack.c.bf16 %v1064_v48, %v1058_v47  ;;  %v1171_v57 = vadd.f32 %v1170_v46, %v3112_v43  ;;  %v3173_v48 = vpop.permute.xlu0 %958 }
 0x1e5   : > { %v2488_v54 = vpack.c.bf16 %v1066_v52, %v1060_v51  ;;  %v1069_v55 = vpop.f32.mrb[20].mxu1  ;;  %v1173_v61 = vadd.f32 %v1172_v50, %v3112_v43 }
 0x1e6   : > { %v1071_v59 = vpop.f32.mrb[21].mxu1  ;;  %v1070_v7 = vadd.f32 %v1069_v55, %v3124_v34 }
 0x1e7   : > { %v1176_v56 = vpop.f32.mrb[20].mxu0  ;;  %2489 = vmatprep.subr.bf16.mxu1 %v2488_v54  ;;  %v1072_v11 = vadd.f32 %v1071_v59, %v3124_v34 }
 0x1e8   : > { %v1177_v58 = vadd.f32 %v1176_v56, %v3114_v44  ;;  %v1178_v60 = vpop.f32.mrb[21].mxu0  ;;  %2491 = vmatpush1.bf16.msra.mxu1 %v2490_v53 }
 0x1e9   : > { %v1179_v62 = vadd.f32 %v1178_v60, %v3114_v44  ;;  %v1075_v4 = vpop.f32.mrb[22].mxu1 }
 0x1ea   : > { %v2498_v0 = vpack.c.bf16 %v1177_v58, %v1171_v57  ;;  %v1076_v8 = vadd.f32 %v1075_v4, %v3126_v63  ;;  %v1077_v9 = vpop.f32.mrb[23].mxu1 }
 0x1eb   : > { %v2496_v2 = vpack.c.bf16 %v1179_v62, %v1173_v61  ;;  %v1182_v5 = vpop.f32.mrb[22].mxu0  ;;  %v1078_v12 = vadd.f32 %v1077_v9, %v3126_v63 }
 0x1ec   : > { %v1184_v10 = vpop.f32.mrb[23].mxu0  ;;  %v2494_v42 = vpack.c.bf16 %v1076_v8, %v1070_v7  ;;  %v1183_v16 = vadd.f32 %v1182_v5, %v3124_v34 }
 0x1ed   : > { %v2492_v13 = vpack.c.bf16 %v1078_v12, %v1072_v11  ;;  %v1081_v14 = vpop.f32.mrb[24].mxu1  ;;  %v1185_v20 = vadd.f32 %v1184_v10, %v3124_v34 }
 0x1ee   : > { %v1083_v18 = vpop.f32.mrb[25].mxu1  ;;  %v3141_v28 = vadd.f32 %v1081_v14, %v3136_v22 }
 0x1ef   : > { %v1188_v15 = vpop.f32.mrb[24].mxu0  ;;  %2493 = vmatprep.subr.bf16.mxu1 %v2492_v13  ;;  %v3149_v32 = vadd.f32 %v1083_v18, %v3136_v22 }
 0x1f0   : > { %v1189_v17 = vadd.f32 %v1188_v15, %v3126_v63  ;;  %v1190_v19 = vpop.f32.mrb[25].mxu0  ;;  %2495 = vmatpush1.bf16.msra.mxu1 %v2494_v42 }
 0x1f1   : > { %v1191_v21 = vadd.f32 %v1190_v19, %v3126_v63  ;;  %v1087_v26 = vpop.f32.mrb[26].mxu1  ;;  %2497 = vmatprep.subr.bf16.mxu1 %v2496_v2 }
 0x1f2   : > { %v2502_v24 = vpack.c.bf16 %v1189_v17, %v1183_v16  ;;  %v3144_v41 = vadd.f32 %v1087_v26, %v3138_v23  ;;  %v1089_v29 = vpop.f32.mrb[27].mxu1 }
 0x1f3   : > { %v2500_v25 = vpack.c.bf16 %v1191_v21, %v1185_v20  ;;  %v1194_v27 = vpop.f32.mrb[26].mxu0  ;;  %v3152_v33 = vadd.f32 %v1089_v29, %v3138_v23  ;;  %2408 = vmatmul.mubr.msk.f32.vlgmr.msra.gmra.mrb[48].mxu1 %vm383_vm0, %v3146_v31 }
 0x1f4   : > { %v1196_v30 = vpop.f32.mrb[27].mxu0  ;;  %v2522_v1 = vpack.c.bf16 %v3144_v41, %v3141_v28  ;;  %2499 = vmatpush1.bf16.msra.mxu1 %v2498_v0  ;;  %1582 = vmatprep.mubr.f32.mxu1 %v2734_v6  ;;  %v3162_v38 = vadd.f32 %v1194_v27, %v3136_v22 }
 0x1f5   : > { %v2520_v35 = vpack.c.bf16 %v3152_v33, %v3149_v32  ;;  %v1093_v36 = vpop.f32.mrb[28].mxu1  ;;  %2501 = vmatprep.subr.bf16.mxu1 %v2500_v25  ;;  %v3168_v46 = vadd.f32 %v1196_v30, %v3136_v22 }
 0x1f6   : > { %v1095_v40 = vpop.f32.mrb[29].mxu1  ;;  %v3182_v54 = vadd.f32 %v1093_v36, %v3173_v48 }
 0x1f7   : > { %v1200_v37 = vpop.f32.mrb[28].mxu0  ;;  %v3188_v58 = vadd.f32 %v1095_v40, %v3173_v48 }
 0x1f8   : > { %v3165_v39 = vadd.f32 %v1200_v37, %v3138_v23  ;;  %v1202_v45 = vpop.f32.mrb[29].mxu0  ;;  %2503 = vmatpush1.bf16.msra.mxu1 %v2502_v24 }
 0x1f9   : > { %v3171_v47 = vadd.f32 %v1202_v45, %v3138_v23  ;;  %v1099_v52 = vpop.f32.mrb[30].mxu1 }
 0x1fa   : > { %v2530_v50 = vpack.c.bf16 %v3165_v39, %v3162_v38  ;;  %v3185_v55 = vadd.f32 %v1099_v52, %v3175_v49  ;;  %v1101_v56 = vpop.f32.mrb[31].mxu1 }
 0x1fb   : > { %v2528_v51 = vpack.c.bf16 %v3171_v47, %v3168_v46  ;;  %v1206_v53 = vpop.f32.mrb[30].mxu0  ;;  %v3191_v59 = vadd.f32 %v1101_v56, %v3175_v49  ;;  %2409 = vmatmul.mubr.msk.f32.vlgmr.msra.gmra.mrb[50].mxu1 %vm383_vm0, %v3146_v31 }
 0x1fc   : > { %v1208_v57 = vpop.f32.mrb[31].mxu0  ;;  %v2526_v60 = vpack.c.bf16 %v3185_v55, %v3182_v54  ;;  %1724 = vmatprep.mubr.f32.mxu1 %v2734_v6  ;;  %v3201_v2 = vadd.f32 %v1206_v53, %v3173_v48 }
 0x1fd   : > { %v2524_v61 = vpack.c.bf16 %v3191_v59, %v3188_v58  ;;  %v1283_v0 = vpop.f32.mrb[32].mxu1  ;;  %v3207_v8 = vadd.f32 %v1208_v57, %v3173_v48 }
 0x1fe   : > { %v1285_v7 = vpop.f32.mrb[33].mxu1  ;;  %v1284_v13 = vadd.f32 %v1283_v0, %v3112_v43 }
 0x1ff   : > { %v1212_v62 = vpop.f32.mrb[32].mxu0  ;;  %v1286_v17 = vadd.f32 %v1285_v7, %v3112_v43 }
 0x200   : > { %v3204_v4 = vadd.f32 %v1212_v62, %v3175_v49  ;;  %v1214_v5 = vpop.f32.mrb[33].mxu0 }
 0x201   : > { %v3210_v9 = vadd.f32 %v1214_v5, %v3175_v49  ;;  %v1289_v12 = vpop.f32.mrb[34].mxu1 }
 0x202   : > { %v2534_v10 = vpack.c.bf16 %v3204_v4, %v3201_v2  ;;  %v1290_v14 = vadd.f32 %v1289_v12, %v3114_v44  ;;  %v1291_v15 = vpop.f32.mrb[35].mxu1 }
 0x203   : > { %v2532_v11 = vpack.c.bf16 %v3210_v9, %v3207_v8  ;;  %v1396_v42 = vpop.f32.mrb[34].mxu0  ;;  %v1292_v18 = vadd.f32 %v1291_v15, %v3114_v44 }
 0x204   : > { %v1398_v16 = vpop.f32.mrb[35].mxu0  ;;  %v2506_v19 = vpack.c.bf16 %v1290_v14, %v1284_v13  ;;  %v1397_v25 = vadd.f32 %v1396_v42, %v3112_v43 }
 0x205   : > { %v2504_v20 = vpack.c.bf16 %v1292_v18, %v1286_v17  ;;  %v1295_v21 = vpop.f32.mrb[36].mxu1  ;;  %v1399_v30 = vadd.f32 %v1398_v16, %v3112_v43 }
 0x206   : > { %v1297_v27 = vpop.f32.mrb[37].mxu1  ;;  %v1296_v53 = vadd.f32 %v1295_v21, %v3124_v34 }
 0x207   : > { %v1402_v24 = vpop.f32.mrb[36].mxu0  ;;  %2505 = vmatprep.subr.bf16.mxu0 %v2504_v20  ;;  %v1298_v0 = vadd.f32 %v1297_v27, %v3124_v34 }
 0x208   : > { %v1403_v26 = vadd.f32 %v1402_v24, %v3114_v44  ;;  %v1404_v29 = vpop.f32.mrb[37].mxu0  ;;  %2507 = vmatpush1.bf16.msra.mxu0 %v2506_v19 }
 0x209   : > { %v1405_v36 = vadd.f32 %v1404_v29, %v3114_v44  ;;  %v1301_v45 = vpop.f32.mrb[38].mxu1 }
 0x20a   : > { %v2514_v37 = vpack.c.bf16 %v1403_v26, %v1397_v25  ;;  %v1302_v56 = vadd.f32 %v1301_v45, %v3126_v63  ;;  %v1303_v57 = vpop.f32.mrb[39].mxu1 }
 0x20b   : > { %v2512_v40 = vpack.c.bf16 %v1405_v36, %v1399_v30  ;;  %v1408_v52 = vpop.f32.mrb[38].mxu0  ;;  %v1304_v5 = vadd.f32 %v1303_v57, %v3126_v63 }
 0x20c   : > { %v1410_v62 = vpop.f32.mrb[39].mxu0  ;;  %v2510_v43 = vpack.c.bf16 %v1302_v56, %v1296_v53  ;;  %v1409_v42 = vadd.f32 %v1408_v52, %v3124_v34 }
 0x20d   : > { %2513 = vmatprep.subr.bf16.mxu1 %v2512_v40  ;;  %v2508_v44 = vpack.c.bf16 %v1304_v5, %v1298_v0  ;;  %v1307_v7 = vpop.f32.mrb[40].mxu1  ;;  %v1411_v16 = vadd.f32 %v1410_v62, %v3124_v34 }
 0x20e   : > { %2515 = vmatpush1.bf16.msra.mxu1 %v2514_v37  ;;  %v1309_v14 = vpop.f32.mrb[41].mxu1  ;;  %v3236_v24 = vadd.f32 %v1307_v7, %v3136_v22 }
 0x20f   : > { %v1414_v12 = vpop.f32.mrb[40].mxu0  ;;  %2509 = vmatprep.subr.bf16.mxu0 %v2508_v44 }
 0x210   : > { %v1415_v13 = vadd.f32 %v1414_v12, %v3126_v63  ;;  %v1416_v15 = vpop.f32.mrb[41].mxu0  ;;  %2511 = vmatpush1.bf16.msra.mxu0 %v2510_v43 }
 0x211   : > { %v1417_v17 = vadd.f32 %v1416_v15, %v3126_v63  ;;  %v1313_v20 = vpop.f32.mrb[42].mxu1  ;;  %2521 = vmatprep.subr.bf16.mxu0 %v2520_v35  ;;  %v1310_v63 = vadd.f32 %v1309_v14, %v3136_v22 }
 0x212   : > { %v2518_v18 = vpack.c.bf16 %v1415_v13, %v1409_v42  ;;  %v3239_v25 = vadd.f32 %v1313_v20, %v3138_v23  ;;  %v1315_v26 = vpop.f32.mrb[43].mxu1 }
 0x213   : > { %v2516_v19 = vpack.c.bf16 %v1417_v17, %v1411_v16  ;;  %v1420_v21 = vpop.f32.mrb[42].mxu0  ;;  %v1316_v27 = vadd.f32 %v1315_v26, %v3138_v23  ;;  %2410 = vmatmul.mubr.msk.f32.vlgmr.msra.gmra.mrb[50].mxu0 %vm383_vm0, %v3146_v31 }
 0x214   : > { %v1422_v34 = vpop.f32.mrb[43].mxu0  ;;  %v2538_v32 = vpack.c.bf16 %v3239_v25, %v3236_v24  ;;  %v3251_v30 = vadd.f32 %v1420_v21, %v3136_v22 }
 0x215   : > { %2517 = vmatprep.subr.bf16.mxu1 %v2516_v19  ;;  %v2536_v33 = vpack.c.bf16 %v1316_v27, %v1310_v63  ;;  %v1319_v35 = vpop.f32.mrb[44].mxu1  ;;  %v1423_v45 = vadd.f32 %v1422_v34, %v3136_v22 }
 0x216   : > { %2519 = vmatpush1.bf16.msra.mxu1 %v2518_v18  ;;  %v1321_v37 = vpop.f32.mrb[45].mxu1  ;;  %v3266_v56 = vadd.f32 %v1319_v35, %v3173_v48 }
 0x217   : > { %v1426_v29 = vpop.f32.mrb[44].mxu0  ;;  %2529 = vmatprep.subr.bf16.mxu1 %v2528_v51 }
 0x218   : > { %v3254_v36 = vadd.f32 %v1426_v29, %v3138_v23  ;;  %v1428_v40 = vpop.f32.mrb[45].mxu0 }
 0x219   : > { %v1429_v52 = vadd.f32 %v1428_v40, %v3138_v23  ;;  %2411 = vmatmul.mubr.msk.f32.vlgmr.msra.gmra.mrb[52].mxu1 %vm383_vm0, %v3146_v31  ;;  %v1325_v47 = vpop.f32.mrb[46].mxu1  ;;  %2523 = vmatpush1.bf16.xpose.msra.mxu0 %v2522_v1  ;;  %v3275_v31 = vadd.f32 %v1321_v37, %v3173_v48 }
 0x21a   : > { %v2546_v53 = vpack.c.bf16 %v3254_v36, %v3251_v30  ;;  %v3269_v22 = vadd.f32 %v1325_v47, %v3175_v49  ;;  %v1327_v23 = vpop.f32.mrb[47].mxu1  ;;  %2525 = vmatprep.subr.bf16.mxu0 %v2524_v61 }
 0x21b   : > { %v2544_v46 = vpack.c.bf16 %v1429_v52, %v1423_v45  ;;  %v1432_v51 = vpop.f32.mrb[46].mxu0  ;;  %v3278_v62 = vadd.f32 %v1327_v23, %v3175_v49 }
 0x21c   : > { %v1434_v57 = vpop.f32.mrb[47].mxu0  ;;  %v2542_v28 = vpack.c.bf16 %v3269_v22, %v3266_v56  ;;  %v3288_v58 = vadd.f32 %v1432_v51, %v3173_v48 }
 0x21d   : > { %v2540_v41 = vpack.c.bf16 %v3278_v62, %v3275_v31  ;;  %v3297_v0 = vadd.f32 %v1434_v57, %v3173_v48 }
 0x21f   : > { %v1438_v1 = vpop.f32.mrb[48].mxu0  ;;  %2531 = vmatpush1.bf16.xpose.msra.mxu1 %v2530_v50 }
 0x220   : > { %v3291_v59 = vadd.f32 %v1438_v1, %v3175_v49  ;;  %v1440_v61 = vpop.f32.mrb[49].mxu0  ;;  %2533 = vmatprep.subr.bf16.mxu1 %v2532_v11 }
 0x221   : > { %v3300_v5 = vadd.f32 %v1440_v61, %v3175_v49  ;;  %2527 = vmatpush1.bf16.xpose.msra.mxu0 %v2526_v60 }
 0x222   : > { %v2550_v38 = vpack.c.bf16 %v3291_v59, %v3288_v58  ;;  %2537 = vmatprep.subr.bf16.mxu0 %v2536_v33 }
 0x223   : > { %v2548_v39 = vpack.c.bf16 %v3300_v5, %v3297_v0 }
 0x227   : > { %2535 = vmatpush1.bf16.xpose.msra.mxu1 %v2534_v10 }
 0x228   : > { %2545 = vmatprep.subr.bf16.mxu1 %v2544_v46 }
 0x2c6   : > { %v1513_v48 = vpop.f32.mrb[48].mxu1 }
 0x2c7   : > { %v1731_v49 = vmul.f32 0.17677669, %v1513_v48  ;;  %v1515_v50 = vpop.f32.mrb[49].mxu1 }
 0x2c8   : > { %v1732_v8 = vmul.f32 0.17677669, %v1515_v50 }
 0x2c9   : > { %v1739_v9 = vrot.slane %v1731_v49, 4 }
 0x2ca   : > { %v1745_v11 = vrot.slane %v1732_v8, 4 }
 0x2cb   : > { %v1740_v43 = vmax.f32 %v1731_v49, %v1739_v9 }
 0x2cc   : > { %v1746_v44 = vmax.f32 %v1732_v8, %v1745_v11 }
 0x2cd   : > { %v1741_v54 = vrot.slane %v1740_v43, 2 }
 0x2ce   : > { %v1747_v55 = vrot.slane %v1746_v44, 2  ;;  %v1584_v60 = vpop.f32.mrb[50].mxu1 }
 0x2cf   : > { %v1742_v7 = vmax.f32 %v1740_v43, %v1741_v54  ;;  %v1733_v12 = vmul.f32 0.17677669, %v1584_v60  ;;  %v1586_v2 = vpop.f32.mrb[51].mxu1 }
 0x2d0   : > { %v1748_v4 = vmax.f32 %v1746_v44, %v1747_v55  ;;  %v1734_v10 = vmul.f32 0.17677669, %v1586_v2 }
 0x2d1   : > { %v1743_v42 = vrot.slane %v1742_v7, 1  ;;  %v1751_v13 = vrot.slane %v1733_v12, 4 }
 0x2d2   : > { %v1749_v14 = vrot.slane %v1748_v4, 1  ;;  %v1757_v15 = vrot.slane %v1734_v10, 4 }
 0x2d3   : > { %v1744_v16 = vmax.f32 %v1742_v7, %v1743_v42  ;;  %v1752_v17 = vmax.f32 %v1733_v12, %v1751_v13 }
 0x2d4   : > { %v1750_v18 = vmax.f32 %v1748_v4, %v1749_v14  ;;  %v1758_v19 = vmax.f32 %v1734_v10, %v1757_v15 }
 0x2d5   : > { %v1787_v20 = vsub.f32 %v1731_v49, %v1744_v16  ;;  %v1753_v21 = vrot.slane %v1752_v17, 2 }
 0x2d6   : > { %v1788_v26 = vsub.f32 %v1732_v8, %v1750_v18  ;;  %v1759_v34 = vrot.slane %v1758_v19, 2 }
 0x2d7   : > { %v1795_v63 = vmul.f32 1.442695, %v1787_v20  ;;  %v1754_v27 = vmax.f32 %v1752_v17, %v1753_v21 }
 0x2d8   : > { %v1797_v33 = vmul.f32 1.442695, %v1788_v26  ;;  %v1760_v35 = vmax.f32 %v1758_v19, %v1759_v34 }
 0x2d9   : > { %2619 = vpow2.f32 %v1795_v63  ;;  %v1755_v29 = vrot.slane %v1754_v27, 1 }
 0x2da   : > { %2621 = vpow2.f32 %v1797_v33  ;;  %v1761_v37 = vrot.slane %v1760_v35, 1 }
 0x2db   : > { %v1756_v40 = vmax.f32 %v1754_v27, %v1755_v29 }
 0x2dc   : > { %v1762_v45 = vmax.f32 %v1760_v35, %v1761_v37 }
 0x2dd   : > { %v1789_v52 = vsub.f32 %v1733_v12, %v1756_v40 }
 0x2de   : > { %v1790_v46 = vsub.f32 %v1734_v10, %v1762_v45 }
 0x2df   : > { %v1799_v47 = vmul.f32 1.442695, %v1789_v52 }
 0x2e0   : > { %v1801_v51 = vmul.f32 1.442695, %v1790_v46 }
 0x2e1   : > { %2623 = vpow2.f32 %v1799_v47 }
 0x2e2   : > { %2625 = vpow2.f32 %v1801_v51 }
 0x2e3   : > { %v3314_v23 = vpop.eup %2619 }
 0x2e4   : > { %v3316_v57 = vpop.eup %2621  ;;  %v1811_v1 = vrot.slane %v3314_v23, 4 }
 0x2e5   : > { %v1817_v61 = vrot.slane %v3316_v57, 4 }
 0x2e6   : > { %v1655_v48 = vpop.f32.mrb[50].mxu0  ;;  %v1812_v49 = vadd.f32 %v3314_v23, %v1811_v1 }
 0x2e7   : > { %v1735_v50 = vmul.f32 0.17677669, %v1655_v48  ;;  %v1657_v8 = vpop.f32.mrb[51].mxu0  ;;  %v1818_v9 = vadd.f32 %v3316_v57, %v1817_v61 }
 0x2e8   : > { %v1736_v11 = vmul.f32 0.17677669, %v1657_v8  ;;  %v1813_v43 = vrot.slane %v1812_v49, 2 }
 0x2e9   : > { %v1763_v44 = vrot.slane %v1735_v50, 4  ;;  %v1819_v54 = vrot.slane %v1818_v9, 2 }
 0x2ea   : > { %v1769_v55 = vrot.slane %v1736_v11, 4  ;;  %v1814_v7 = vadd.f32 %v1813_v43, %v1812_v49 }
 0x2eb   : > { %v3322_v12 = vpop.eup %2623  ;;  %v1764_v2 = vmax.f32 %v1735_v50, %v1763_v44  ;;  %v1820_v42 = vadd.f32 %v1819_v54, %v1818_v9 }
 0x2ec   : > { %v1726_v60 = vpop.f32.mrb[52].mxu1  ;;  %v3324_v13 = vpop.eup %2625  ;;  %v1770_v14 = vmax.f32 %v1736_v11, %v1769_v55  ;;  %v1815_v16 = vrot.slane %v1814_v7, 1  ;;  %v1823_v17 = vrot.slane %v3322_v12, 4 }
 0x2ed   : > { %v1737_v4 = vmul.f32 0.17677669, %v1726_v60  ;;  %v1728_v10 = vpop.f32.mrb[53].mxu1  ;;  %v1765_v18 = vrot.slane %v1764_v2, 2  ;;  %v1821_v20 = vrot.slane %v1820_v42, 1  ;;  %v1829_v21 = vrot.slane %v3324_v13, 4 }
 0x2ee   : > { %v1738_v15 = vmul.f32 0.17677669, %v1728_v10  ;;  %v1771_v26 = vrot.slane %v1770_v14, 2  ;;  %v1816_v63 = vadd.f32 %v1815_v16, %v1814_v7  ;;  %v1824_v27 = vadd.f32 %v3322_v12, %v1823_v17 }
 0x2ef   : > { %v1775_v19 = vrot.slane %v1737_v4, 4  ;;  %v1766_v33 = vmax.f32 %v1764_v2, %v1765_v18  ;;  %v1822_v29 = vadd.f32 %v1821_v20, %v1820_v42  ;;  %v1830_v37 = vadd.f32 %v3324_v13, %v1829_v21 }
 0x2f0   : > { %v1781_v34 = vrot.slane %v1738_v15, 4  ;;  %v1772_v40 = vmax.f32 %v1770_v14, %v1771_v26  ;;  %2627 = vrcp.f32 %v1816_v63  ;;  %v1825_v52 = vrot.slane %v1824_v27, 2 }
 0x2f1   : > { %v1776_v35 = vmax.f32 %v1737_v4, %v1775_v19  ;;  %v1767_v46 = vrot.slane %v1766_v33, 1  ;;  %2629 = vrcp.f32 %v1822_v29  ;;  %v1831_v51 = vrot.slane %v1830_v37, 2 }
 0x2f2   : > { %v1782_v45 = vmax.f32 %v1738_v15, %v1781_v34  ;;  %v1773_v1 = vrot.slane %v1772_v40, 1  ;;  %v1826_v48 = vadd.f32 %v1825_v52, %v1824_v27 }
 0x2f3   : > { %v1777_v47 = vrot.slane %v1776_v35, 2  ;;  %v1768_v49 = vmax.f32 %v1766_v33, %v1767_v46  ;;  %v1832_v9 = vadd.f32 %v1831_v51, %v1830_v37 }
 0x2f4   : > { %v1783_v61 = vrot.slane %v1782_v45, 2  ;;  %v1774_v43 = vmax.f32 %v1772_v40, %v1773_v1  ;;  %v1827_v54 = vrot.slane %v1826_v48, 1 }
 0x2f5   : > { %v1778_v8 = vmax.f32 %v1776_v35, %v1777_v47  ;;  %v1791_v55 = vsub.f32 %v1735_v50, %v1768_v49  ;;  %v1833_v7 = vrot.slane %v1832_v9, 1 }
 0x2f6   : > { %v1784_v44 = vmax.f32 %v1782_v45, %v1783_v61  ;;  %v1792_v2 = vsub.f32 %v1736_v11, %v1774_v43  ;;  %v1828_v42 = vadd.f32 %v1827_v54, %v1826_v48 }
 0x2f7   : > { %v1779_v60 = vrot.slane %v1778_v8, 1  ;;  %v1803_v14 = vmul.f32 1.442695, %v1791_v55  ;;  %v1834_v17 = vadd.f32 %v1833_v7, %v1832_v9 }
 0x2f8   : > { %v1785_v10 = vrot.slane %v1784_v44, 1  ;;  %v1805_v18 = vmul.f32 1.442695, %v1792_v2  ;;  %2631 = vrcp.f32 %v1828_v42 }
 0x2f9   : > { %v1780_v16 = vmax.f32 %v1778_v8, %v1779_v60  ;;  %2633 = vpow2.f32 %v1803_v14 }
 0x2fa   : > { %v1786_v19 = vmax.f32 %v1784_v44, %v1785_v10  ;;  %v2628_v21 = vpop.eup %2627  ;;  %2635 = vpow2.f32 %v1805_v18  ;;  %v2184_v18 = vld [vmem:[%s3435_s8] sm:$0xff] }
 0x2fb   : > { %v1793_v20 = vsub.f32 %v1737_v4, %v1780_v16  ;;  %v2630_v34 = vpop.eup %2629  ;;  %v1860_v50 = vmul.f32 %v2628_v21, %v3314_v23  ;;  %2637 = vrcp.f32 %v1834_v17  ;;  %v2187_v21 = vld [vmem:[%s3435_s8 + $0x18] sm:$0xff] }
 0x2fc   : > { %v1794_v26 = vsub.f32 %v1738_v15, %v1786_v19  ;;  %v1862_v11 = vmul.f32 %v2630_v34, %v3316_v57 }
 0x2fd   : > { %v1807_v63 = vmul.f32 1.442695, %v1793_v20  ;;  %v2186_v20 = vld [vmem:[%s3435_s8 + $0x10] sm:$0xff] }
 0x2fe   : > { %v1809_v27 = vmul.f32 1.442695, %v1794_v26  ;;  %1940 = vmatprep.mubr.f32.mxu0 %v1862_v11  ;;  %v2159_v33 = vadd.f32 %v1862_v11, %v1860_v50  ;;  %v2556_v26 = vpack.c.bf16 %v2187_v21, %v2186_v20 }
 0x2ff   : > { %2639 = vpow2.f32 %v1807_v63  ;;  %1941 = vmatmul.mubr.f32.vlgmr.msra.gmra.mrb[52].mxu0 %v1860_v50 }
 0x300   : > { %2641 = vpow2.f32 %v1809_v27  ;;  %2539 = vmatpush1.bf16.xpose.msra.mxu0 %v2538_v32 }
 0x301   : > { %2541 = vmatprep.subr.bf16.mxu0 %v2540_v41 }
 0x302   : > { %v2632_v4 = vpop.eup %2631 }
 0x303   : > { %v2634_v15 = vpop.eup %2633  ;;  %v1864_v23 = vmul.f32 %v2632_v4, %v3322_v12 }
 0x304   : > { %v2636_v35 = vpop.eup %2635  ;;  %v1835_v29 = vrot.slane %v2634_v15, 4 }
 0x305   : > { %v2638_v57 = vpop.eup %2637  ;;  %v2160_v37 = vadd.f32 %v2159_v33, %v1864_v23  ;;  %v1841_v40 = vrot.slane %v2636_v35, 4 }
 0x306   : > { %v1866_v45 = vmul.f32 %v2638_v57, %v3324_v13  ;;  %v1836_v52 = vadd.f32 %v2634_v15, %v1835_v29 }
 0x307   : > { %v1842_v47 = vadd.f32 %v2636_v35, %v1841_v40 }
 0x308   : > { %2010 = vmatprep.mubr.f32.mxu1 %v1866_v45  ;;  %v2161_v25 = vadd.f32 %v2160_v37, %v1866_v45  ;;  %2543 = vmatpush1.bf16.xpose.msra.mxu0 %v2542_v28  ;;  %v1837_v32 = vrot.slane %v1836_v52, 2 }
 0x309   : > { %v2640_v46 = vpop.eup %2639  ;;  %2011 = vmatmul.mubr.f32.vlgmr.msra.gmra.mrb[54].mxu1 %v1864_v23  ;;  %v1843_v62 = vrot.slane %v1842_v47, 2  ;;  %2552 = vmatprep.subr.bf16.mxu0 %v2733_v3 }
 0x30a   : > { %v2642_v24 = vpop.eup %2641  ;;  %v1847_v31 = vrot.slane %v2640_v46, 4  ;;  %2547 = vmatpush1.bf16.xpose.msra.mxu1 %v2546_v53  ;;  %v1838_v12 = vadd.f32 %v1837_v32, %v1836_v52 }
 0x30b   : > { %v1853_v41 = vrot.slane %v2642_v24, 4  ;;  %2549 = vmatprep.subr.bf16.mxu1 %v2548_v39  ;;  %v1844_v51 = vadd.f32 %v1843_v62, %v1842_v47 }
 0x30c   : > { %v1848_v13 = vadd.f32 %v2640_v46, %v1847_v31  ;;  %v1839_v22 = vrot.slane %v1838_v12, 1 }
 0x30d   : > { %v1854_v56 = vadd.f32 %v2642_v24, %v1853_v41  ;;  %v1845_v1 = vrot.slane %v1844_v51, 1 }
 0x30e   : > { %v1849_v28 = vrot.slane %v1848_v13, 2  ;;  %v1840_v48 = vadd.f32 %v1839_v22, %v1838_v12 }
 0x30f   : > { %v1855_v61 = vrot.slane %v1854_v56, 2  ;;  %v1846_v8 = vadd.f32 %v1845_v1, %v1844_v51 }
 0x310   : > { %v1850_v49 = vadd.f32 %v1849_v28, %v1848_v13  ;;  %2643 = vrcp.f32 %v1840_v48 }
 0x311   : > { %v1856_v9 = vadd.f32 %v1855_v61, %v1854_v56  ;;  %2645 = vrcp.f32 %v1846_v8 }
 0x312   : > { %v1851_v43 = vrot.slane %v1850_v49, 1  ;;  %2551 = vmatpush1.bf16.xpose.msra.mxu1 %v2550_v38  ;;  %v2158_v38 = vld [vmem:[#allocation4] sm:$0xff] }
 0x313   : > { %v1857_v30 = vrot.slane %v1856_v9, 1 }
 0x314   : > { %v1852_v36 = vadd.f32 %v1851_v43, %v1850_v49 }
 0x315   : > { %v1858_v53 = vadd.f32 %v1857_v30, %v1856_v9 }
 0x316   : > { %2647 = vrcp.f32 %v1852_v36 }
 0x317   : > { %2649 = vrcp.f32 %v1858_v53 }
 0x31a   : > { %v2644_v0 = vpop.eup %2643 }
 0x31b   : > { %v2646_v5 = vpop.eup %2645  ;;  %v1868_v39 = vmul.f32 %v2644_v0, %v2634_v15 }
 0x31c   : > { %v1870_v44 = vmul.f32 %v2646_v5, %v2636_v35 }
 0x31d   : > { %v2162_v54 = vadd.f32 %v2161_v25, %v1868_v39 }
 0x31e   : > { %2080 = vmatprep.mubr.f32.mxu0 %v1870_v44 }
 0x31f   : > { %2081 = vmatmul.mubr.f32.vlgmr.msra.gmra.mrb[54].mxu0 %v1868_v39  ;;  %v2163_v2 = vadd.f32 %v2162_v54, %v1870_v44 }
 0x320   : > { %v2648_v55 = vpop.eup %2647  ;;  %2447 = vmatprep.mubr.msk.f32.mxu0 %vm2735_vm1, %v2734_v6  ;;  %v2185_v6 = vld [vmem:[%s3435_s8 + $0x8] sm:$0xff] }
 0x321   : > { %v2650_v60 = vpop.eup %2649  ;;  %v1872_v7 = vmul.f32 %v2648_v55, %v2640_v46  ;;  %v2553_v19 = vpack.c.bf16 %v2185_v6, %v2184_v18  ;;  %v2412_v46 = vld [vmem:[%s3436_s9] ss:$0 sm:$0xff] }
 0x322   : > { %v1874_v10 = vmul.f32 %v2650_v60, %v2642_v24 }
 0x323   : > { %v2164_v58 = vadd.f32 %v2163_v2, %v1872_v7  ;;  %2554 = vmatpush3.bf16.msra.mxu0 %v2553_v19 }
 0x324   : > { %2150 = vmatprep.mubr.f32.mxu1 %v1874_v10  ;;  %2555 = vmatprep.subr.bf16.mxu0 %v2733_v3  ;;  %v1875_v3 = vld [vmem:[#allocation3] sm:$0xff] }
 0x325   : > { %2151 = vmatmul.mubr.f32.vlgmr.msra.gmra.mrb[56].mxu1 %v1872_v7  ;;  %v2165_v59 = vadd.f32 %v2164_v58, %v1874_v10 }
 0x327   : > { %2166 = vadd.xlane.f32.xlu0 %v2165_v59  ;;  %2557 = vmatpush3.bf16.msra.mxu0 %v2556_v26 }
 0x3b4   : > { %v2167_v42 = vpop.xlane.xlu0 %2166 }
 0x3b5   : > { %v2168_v14 = vadd.f32 %v2167_v42, %v2158_v38 }
 0x3b7   : > { %2170 = vst.msk [vmem:[#allocation4] sm:$0xff] %vm385_vm3, %v2168_v14 }
 0x3be   : > { %v2175_v16 = vld [vmem:[#allocation4] sm:$0xff] }
 0x3bf   : > { %v2176_v17 = vadd.f32 1e-08, %v2175_v16 }
 0x3c1   : > { %2179 = vperm.xlu1 %2618, %v2176_v17  }
 0x3d2   : > { %v1942_v34 = vpop.f32.mrb[52].mxu0 }
 0x3d3   : > { %v1944_v63 = vpop.f32.mrb[53].mxu0 }
 0x3dc   : > { %v2012_v50 = vpop.f32.mrb[54].mxu1 }
 0x3dd   : > { %v2013_v27 = vadd.f32 %v2012_v50, %v1942_v34  ;;  %v2014_v11 = vpop.f32.mrb[55].mxu1 }
 0x3f2   : > { %v2082_v33 = vpop.f32.mrb[54].mxu0 }
 0x3f3   : > { %v2083_v4 = vadd.f32 %v2082_v33, %v2013_v27  ;;  %v2084_v15 = vpop.f32.mrb[55].mxu0 }
 0x3f8   : > { %v2152_v23 = vpop.f32.mrb[56].mxu1 }
 0x3f9   : > { %v2153_v35 = vadd.f32 %v2152_v23, %v2083_v4  ;;  %v2154_v29 = vpop.f32.mrb[57].mxu1 }
 0x3fb   : > { %v2156_v57 = vadd.f32 %v2153_v35, %v1875_v3 }
 0x3fd   : > { %2157 = vst.msk [vmem:[#allocation3] sm:$0xff] %vm383_vm0, %v2156_v57 }
 0x404   : > { %v2174_v45 = vld [vmem:[#allocation3] sm:$0xff] }
 0x440   : > { %v2180_v37 = vpop.permute.xlu1 %2179 }
 0x441   : > { %2651 = vrcp.f32 %v2180_v37 }
 0x44b   : > { %v2652_v40 = vpop.eup %2651 }
 0x44c   : > { %v2183_v52 = vmul.f32 %v2652_v40, %v2174_v45 }
 0x44e   : > { %2448 = vmatmul.mubr.msk.f32.vlgmr.msra.gmra.mrb[56].mxu0 %vm383_vm0, %v2183_v52 }
 0x521   : > { %v2264_v47 = vpop.f32.mrb[56].mxu0 }
 0x522   : > { %v2265_v24 = vadd.f32 %v2412_v46, %v2264_v47  ;;  %v2449_v25 = vpop.f32.mrb[57].mxu0 }
 0x524   : > { %2268 = vst.msk [vmem:[%s370_s22] sm:$0xff] %vm383_vm0, %v2265_v24 }
 0x525   : > { %2666 = shalt.err (!%p2663_p5)
}
 0x526   : > { %s2667_s19 = scalar_lea.hbm %s3379_s28, 128  ;;  %s2671_s22 = scalar_lea.hbm %s3437_s10, 256 }
 0x527   : > { %p2668_p6 = scmp.ne.s32.totalorder %s3379_s28, %s2667_s19  ;;  %p2672_p10 = scmp.lt.u32.totalorder %s3379_s28, %s3437_s10 }
 0x528   : > { %p2673_p11 = scmp.lt.u32.totalorder %s2671_s22, %s2667_s19  ;;  %p2675_p13 = scmp.lt.u32.totalorder %s2667_s19, %s3379_s28 }
 0x529   : > { %p2669_p7 = pnand %p2668_p6, %p2833_p4 }
 0x52a   : > { %p2674_p12 = por %p2673_p11, %p2672_p10 }
 0x52b   : > { %p2670_p9 = pneg %p2669_p7 }
 0x52c   : > { %p2676_p0 = por %p2675_p13, %p2674_p12 }
 0x52e   : > { %p2677_p1 = pnand %p2676_p0, %p2670_p9 }
 0x530   : > { %2680 = shalt.err (!%p2677_p1)
}
 0x531   : > { %2558 = dma.vmem_to_hbm [thread:$0]  (%p2833_p4), %s3381_s20, 128, %s3379_s28, %s2270_s1  }
 0x532 PF: > { %p2564_p2 = scmp.ge.s32.totalorder %s2731_s18, 2  ;;  %s2295_s21 = sand.u32 1, %s2711_s13  }
 0x533   : > { %s2296_s16 = scalar_lea.sflag [#allocation6], %s2295_s21 }
 0x534   : > { %p2561_p3 = pnand %p2564_p2, %p2840_p8 }
 0x536   : > { %2706 = dma.done.wait (!%p2561_p3), %s2296_s16, 128  }
 0x537   : > { %2708 = vsyncadd (!%p2561_p3), %s2296_s16, 4294967168  ;;  %s23_s18 = sadd.s32 1, %s2731_s18   ;;  %s3444_s23 = sld [smem:[#allocation8_spill]] }
 0x538   : > { %p20_p5 = scmp.ge.s32.totalorder %s23_s18, 4   ;;  %s3445_s13 = smov %s2715_s14 }
 0x539   : > { %s3446_s14 = smov %s2719_s15  ;;  %s3447_s15 = smov %s2846_s26 }
 0x53a   : > { %s3448_s16 = smov %s2727_s17  ;;  %22 = sbr.rel (!%p20_p5) target bundleno = 6 (0x6), region = 103 }
 0x53d   : > { %s3449_s17 = smov %s3444_s23 }
 0x541   :  { %2301 = vsyncpa [#allocation6], 1 }
 0x542   :  { %2303 = vsyncpa [#allocation6 + $0x1], 1 }

</bundles_post_ra>
